<compile_context>
chip_gen: v6e
topology: v6e:2x2x1
jax: 0.10.0
libtpu: 0.0.40
codegen_flags: <defaults>
</compile_context>

<pallas_src>
import functools

import jax
import jax.numpy as jnp
from jax.experimental import pallas as pl
from jax.experimental.pallas import tpu as pltpu


def _round_up(n, m):
    return ((n + m - 1) // m) * m


def _lstm_gate_math(gates, c_prev, Hp):
    """torch.nn.LSTMCell gate order [i | f | g | o], each in its own Hp lane block."""
    i_g = jax.nn.sigmoid(gates[:, 0 * Hp:1 * Hp])
    f_g = jax.nn.sigmoid(gates[:, 1 * Hp:2 * Hp])
    g_g = jnp.tanh(gates[:, 2 * Hp:3 * Hp])
    o_g = jax.nn.sigmoid(gates[:, 3 * Hp:4 * Hp])
    c_new = f_g * c_prev + i_g * g_g
    h_new = o_g * jnp.tanh(c_new)
    return h_new, c_new


def _lstm_fused_kernel(x_ref, bias_ref, wih_hbm, whh_hbm, out_ref,
                       pg_scr, wih_vmem, whh_vmem, h_bf, c_scr, sem):
    """One grid step == one chunk of Tc time steps (input projection fused).

    x_ref   : (Tc, Bp, Dinp) bf16   input chunk (auto-pipelined)
    bias_ref: (1, 4*Hp)      f32    b_ih + b_hh, gate-aligned
    wih_hbm : (Dinp, 4*Hp)   bf16   HBM ref, staged once into wih_vmem
    whh_hbm : (Hp, 4*Hp)     bf16   HBM ref, staged once into whh_vmem
    out_ref : (Tc, Bp, Hp)          hidden-state outputs for this chunk
    pg_scr  : (Tc, Bp, 4*Hp) f32    per-chunk pre-gates (VMEM only, no HBM trip)
    h_bf    : (Bp, Hp)       bf16   hidden carry (MXU LHS), persists across grid
    c_scr   : (Bp, Hp)       f32    cell carry, persists across grid
    """
    Tc, Bp, Dinp = x_ref.shape
    Hp = h_bf.shape[-1]

    @pl.when(pl.program_id(0) == 0)
    def _():
        # Stage the weights exactly once (single-buffered, unlike a BlockSpec
        # input which would be double-buffered by default) and reset the state.
        cpi = pltpu.make_async_copy(wih_hbm, wih_vmem, sem.at[0])
        cph = pltpu.make_async_copy(whh_hbm, whh_vmem, sem.at[1])
        cpi.start()
        cph.start()
        cpi.wait()
        cph.wait()
        h_bf[...] = jnp.zeros_like(h_bf)
        c_scr[...] = jnp.zeros_like(c_scr)

    # Non-recurrent projection for the whole chunk as ONE matmul — this is off
    # the serial dependency chain and pipelines freely with the recurrence.
    x2d = x_ref[...].reshape(Tc * Bp, Dinp)
    pre = jnp.dot(x2d, wih_vmem[...], preferred_element_type=jnp.float32)
    pre = pre + bias_ref[...]
    pg_scr[...] = pre.reshape(Tc, Bp, 4 * Hp)

    def step(t, carry):
        h_prev = h_bf[...]            # bf16: feeds the MXU directly, no cast
        c_prev = c_scr[...]
        gates = pg_scr[t] + jnp.dot(h_prev, whh_vmem[...],
                                    preferred_element_type=jnp.float32)
        h_new, c_new = _lstm_gate_math(gates, c_prev, Hp)
        c_scr[...] = c_new
        h_bf[...] = h_new.astype(jnp.bfloat16)
        out_ref[t] = h_new.astype(out_ref.dtype)
        return carry

    jax.lax.fori_loop(0, Tc, step, 0, unroll=min(Tc, 8))


def _lstm_hoisted_kernel(pg_ref, whh_hbm, out_ref, whh_vmem, h_bf, c_scr, sem):
    """Fallback: pre-gates hoisted to XLA (bf16 in HBM); kernel does recurrence only."""
    Tc = pg_ref.shape[0]
    Hp = h_bf.shape[-1]

    @pl.when(pl.program_id(0) == 0)
    def _():
        cp = pltpu.make_async_copy(whh_hbm, whh_vmem, sem.at[0])
        cp.start()
        cp.wait()
        h_bf[...] = jnp.zeros_like(h_bf)
        c_scr[...] = jnp.zeros_like(c_scr)

    def step(t, carry):
        gates = pg_ref[t].astype(jnp.float32) + jnp.dot(
            h_bf[...], whh_vmem[...], preferred_element_type=jnp.float32)
        h_new, c_new = _lstm_gate_math(gates, c_scr[...], Hp)
        c_scr[...] = c_new
        h_bf[...] = h_new.astype(jnp.bfloat16)
        out_ref[t] = h_new.astype(out_ref.dtype)
        return carry

    jax.lax.fori_loop(0, Tc, step, 0, unroll=min(Tc, 8))


def lstm_recurrent_layer(x, w_ih, w_hh, b_ih, b_hh, *, time_chunk=32,
                         vmem_budget_bytes=48 * 1024 * 1024):
    """x: (T, B, Din); w_ih: (4H, Din); w_hh: (4H, H); biases: (4H,).
    Returns (T, B, H) stack of hidden states (== PyTorch module output)."""
    T, B, Din = x.shape
    fourH, H = w_hh.shape
    assert fourH == 4 * H and w_ih.shape == (fourH, Din)

    Hp = _round_up(H, 128)          # lane-aligned gate / state width
    Bp = _round_up(B, 8)            # full sublanes
    Dinp = _round_up(Din, 128)      # lane-aligned input width

    # --- gate-aligned (padded) weight layout: each gate gets its own Hp lanes ---
    # Padded gate columns / padded h rows are zero, so padded lanes stay exactly
    # zero through the recurrence (c0 = 0, bias padded with 0).
    wih_t = jnp.pad(w_ih.reshape(4, H, Din), ((0, 0), (0, Hp - H), (0, Dinp - Din)))
    wih_t = wih_t.transpose(2, 0, 1).reshape(Dinp, 4 * Hp).astype(jnp.bfloat16)
    whh_t = jnp.pad(w_hh.reshape(4, H, H), ((0, 0), (0, Hp - H), (0, Hp - H)))
    whh_t = whh_t.transpose(2, 0, 1).reshape(Hp, 4 * Hp).astype(jnp.bfloat16)
    bias = jnp.pad((b_ih + b_hh).reshape(4, H), ((0, 0), (0, Hp - H)))
    bias = bias.reshape(1, 4 * Hp).astype(jnp.float32)

    # --- pick the largest time chunk that fits the (v7x-safe) VMEM budget ---
    def fused_bytes(tc):
        return (2 * tc * Bp * Dinp * 2          # x chunk, double-buffered bf16
                + 2 * 4 * Hp * 4 * 2            # bias, double-buffered f32
                + 2 * tc * Bp * Hp * 4          # out chunk, double-buffered f32
                + tc * Bp * 4 * Hp * 4          # pre-gate scratch f32
                + Dinp * 4 * Hp * 2             # W_ih^T (single-buffered) bf16
                + Hp * 4 * Hp * 2               # W_hh^T (single-buffered) bf16
                + Bp * Hp * (2 + 4))            # h (bf16) + c (f32) carries

    Tc = max(1, min(time_chunk, T))
    while Tc > 8 and fused_bytes(Tc) > vmem_budget_bytes:
        Tc = max(8, Tc // 2)
    use_fused = fused_bytes(Tc) <= vmem_budget_bytes

    Tp = _round_up(T, Tc)
    n_chunks = Tp // Tc
    x_p = jnp.pad(x, ((0, Tp - T), (0, Bp - B), (0, Dinp - Din)))

    if use_fused:
        est = fused_bytes(Tc)
    else:
        est = (2 * Tc * Bp * 4 * Hp * 2 + 2 * Tc * Bp * Hp * 4
               + Hp * 4 * Hp * 2 + Bp * Hp * 6)
    # Leave headroom but never request more than v7x's 64 MiB physical VMEM.
    vmem_limit = int(min(64 * 1024 * 1024,
                         max(32 * 1024 * 1024, est + 16 * 1024 * 1024)))

    compiler_params = pltpu.CompilerParams(
        # Time chunks are strictly sequential (state is carried in scratch).
        dimension_semantics=("arbitrary",),
        vmem_limit_bytes=vmem_limit,
    )

    if use_fused:
        out_p = pl.pallas_call(
            _lstm_fused_kernel,
            out_shape=jax.ShapeDtypeStruct((Tp, Bp, Hp), x.dtype),
            grid_spec=pltpu.PrefetchScalarGridSpec(
                num_scalar_prefetch=0,
                grid=(n_chunks,),
                in_specs=[
                    pl.BlockSpec((Tc, Bp, Dinp), lambda c: (c, 0, 0)),  # x chunk
                    pl.BlockSpec((1, 4 * Hp), lambda c: (0, 0)),        # bias
                    pl.BlockSpec(memory_space=pl.ANY),                  # W_ih^T (HBM)
                    pl.BlockSpec(memory_space=pl.ANY),                  # W_hh^T (HBM)
                ],
                out_specs=pl.BlockSpec((Tc, Bp, Hp), lambda c: (c, 0, 0)),
                scratch_shapes=[
                    pltpu.VMEM((Tc, Bp, 4 * Hp), jnp.float32),  # chunk pre-gates
                    pltpu.VMEM((Dinp, 4 * Hp), jnp.bfloat16),   # W_ih^T resident
                    pltpu.VMEM((Hp, 4 * Hp), jnp.bfloat16),     # W_hh^T resident
                    pltpu.VMEM((Bp, Hp), jnp.bfloat16),         # hidden carry (MXU LHS)
                    pltpu.VMEM((Bp, Hp), jnp.float32),          # cell carry
                    pltpu.SemaphoreType.DMA((2,)),
                ],
            ),
            compiler_params=compiler_params,
        )(x_p.astype(jnp.bfloat16), bias, wih_t, whh_t)
    else:
        # Fallback when a resident W_ih^T would not fit the VMEM budget:
        # hoist the input projection to XLA, stream bf16 pre-gates into the kernel.
        pre_gates = (jnp.einsum(
            "tbd,dg->tbg", x_p.astype(jnp.bfloat16), wih_t,
            preferred_element_type=jnp.float32) + bias[None]).astype(jnp.bfloat16)
        out_p = pl.pallas_call(
            _lstm_hoisted_kernel,
            out_shape=jax.ShapeDtypeStruct((Tp, Bp, Hp), x.dtype),
            grid_spec=pltpu.PrefetchScalarGridSpec(
                num_scalar_prefetch=0,
                grid=(n_chunks,),
                in_specs=[
                    pl.BlockSpec((Tc, Bp, 4 * Hp), lambda c: (c, 0, 0)),
                    pl.BlockSpec(memory_space=pl.ANY),                  # W_hh^T (HBM)
                ],
                out_specs=pl.BlockSpec((Tc, Bp, Hp), lambda c: (c, 0, 0)),
                scratch_shapes=[
                    pltpu.VMEM((Hp, 4 * Hp), jnp.bfloat16),
                    pltpu.VMEM((Bp, Hp), jnp.bfloat16),
                    pltpu.VMEM((Bp, Hp), jnp.float32),
                    pltpu.SemaphoreType.DMA((1,)),
                ],
            ),
            compiler_params=compiler_params,
        )(pre_gates, whh_t)

    return out_p[:T, :B, :H]


def lstm_reference(x, w_ih, w_hh, b_ih, b_hh):
    """Pure-JAX f32 reference matching torch.nn.LSTMCell semantics."""
    T, B, Din = x.shape
    H = w_hh.shape[1]

    def step(carry, xt):
        h, c = carry
        gates = xt @ w_ih.T + b_ih + h @ w_hh.T + b_hh
        i_g, f_g, g_g, o_g = jnp.split(gates, 4, axis=-1)
        i_g = jax.nn.sigmoid(i_g)
        f_g = jax.nn.sigmoid(f_g)
        g_g = jnp.tanh(g_g)
        o_g = jax.nn.sigmoid(o_g)
        c_new = f_g * c + i_g * g_g
        h_new = o_g * jnp.tanh(c_new)
        return (h_new, c_new), h_new

    h0 = jnp.zeros((B, H), x.dtype)
    c0 = jnp.zeros((B, H), x.dtype)
    _, outs = jax.lax.scan(step, (h0, c0), x)
    return outs


if __name__ == "__main__":
    T, B, Din, H = 8, 4, 16, 32   # seq=8, batch=4, size_in=16, hidden=32

    key = jax.random.PRNGKey(0)
    kx, k1, k2, k3, k4 = jax.random.split(key, 5)

    x = jax.random.normal(kx, (T, B, Din), dtype=jnp.float32)
    scale = 1.0 / jnp.sqrt(H)
    w_ih = jax.random.normal(k1, (4 * H, Din), dtype=jnp.float32) * scale
    w_hh = jax.random.normal(k2, (4 * H, H), dtype=jnp.float32) * scale
    b_ih = jax.random.normal(k3, (4 * H,), dtype=jnp.float32) * scale
    b_hh = jax.random.normal(k4, (4 * H,), dtype=jnp.float32) * scale

    out = jax.block_until_ready(lstm_recurrent_layer(x, w_ih, w_hh, b_ih, b_hh))
    ref = jax.block_until_ready(lstm_reference(x, w_ih, w_hh, b_ih, b_hh))

    assert out.shape == (T, B, H)
    # bf16 matmul operands and bf16 h carry (f32 accumulation) -> looser tolerance.
    max_err = float(jnp.max(jnp.abs(out - ref)))
    assert max_err < 5e-2, f"mismatch vs JAX reference, max abs err = {max_err}"

    print("KERNEL_OK")
</pallas_src>

<mosaic_0001>
module attributes {stable_mosaic.version = 11 : i64} {
  func.func @_lstm_fused_kernel(%arg0: i32, %arg1: memref<8x8x128xbf16, #tpu.memory_space<vmem>>, %arg2: memref<1x512xf32, #tpu.memory_space<vmem>>, %arg3: memref<128x512xbf16, #tpu.memory_space<any>>, %arg4: memref<128x512xbf16, #tpu.memory_space<any>>, %arg5: memref<8x8x128xf32, #tpu.memory_space<vmem>>, %arg6: memref<8x8x512xf32, #tpu.memory_space<vmem>>, %arg7: memref<128x512xbf16, #tpu.memory_space<vmem>>, %arg8: memref<128x512xbf16, #tpu.memory_space<vmem>>, %arg9: memref<8x128xbf16, #tpu.memory_space<vmem>>, %arg10: memref<8x128xf32, #tpu.memory_space<vmem>>, %arg11: memref<2x!tpu.dma_semaphore, #tpu.memory_space<semaphore_mem>>) attributes {dimension_semantics = [#tpu.dimension_semantics<arbitrary>], iteration_bounds = array<i64: 1>, scalar_prefetch = 0 : i64, scratch_operands = 6 : i64, tpu.core_type = #tpu.core_type<tc>, window_params = [{transform_indices = @transform_0, window_bounds = array<i64: 8, 8, 128>}, {pipeline_mode = #tpu.pipeline_mode<synchronous>, transform_indices = @transform_1, window_bounds = array<i64: 1, 512>}, {}, {}, {transform_indices = @transform_4, window_bounds = array<i64: 8, 8, 128>}]} {
    %c0_i32 = arith.constant 0 : i32
    %0 = arith.cmpi eq, %arg0, %c0_i32 : i32
    %1 = arith.extui %0 : i1 to i32
    %c0_i32_0 = arith.constant 0 : i32
    %2 = arith.cmpi ne, %1, %c0_i32_0 : i32
    scf.if %2 {
      %c0_i32_155 = arith.constant 0 : i32
      %332 = tpu.memref_slice %arg11[%c0_i32_155] : memref<2x!tpu.dma_semaphore, #tpu.memory_space<semaphore_mem>> -> memref<1x!tpu.dma_semaphore, #tpu.memory_space<semaphore_mem>>
      %333 = tpu.memref_squeeze %332 : memref<1x!tpu.dma_semaphore, #tpu.memory_space<semaphore_mem>> -> memref<!tpu.dma_semaphore, #tpu.memory_space<semaphore_mem>>
      tpu.enqueue_dma source(%arg3 : memref<128x512xbf16, #tpu.memory_space<any>>) target(%arg7 : memref<128x512xbf16, #tpu.memory_space<vmem>>) target_semaphore(%333 : memref<!tpu.dma_semaphore, #tpu.memory_space<semaphore_mem>>)
      %c1_i32_156 = arith.constant 1 : i32
      %334 = tpu.memref_slice %arg11[%c1_i32_156] : memref<2x!tpu.dma_semaphore, #tpu.memory_space<semaphore_mem>> -> memref<1x!tpu.dma_semaphore, #tpu.memory_space<semaphore_mem>>
      %335 = tpu.memref_squeeze %334 : memref<1x!tpu.dma_semaphore, #tpu.memory_space<semaphore_mem>> -> memref<!tpu.dma_semaphore, #tpu.memory_space<semaphore_mem>>
      tpu.enqueue_dma source(%arg4 : memref<128x512xbf16, #tpu.memory_space<any>>) target(%arg8 : memref<128x512xbf16, #tpu.memory_space<vmem>>) target_semaphore(%335 : memref<!tpu.dma_semaphore, #tpu.memory_space<semaphore_mem>>)
      %c0_i32_157 = arith.constant 0 : i32
      %336 = tpu.memref_slice %arg11[%c0_i32_157] : memref<2x!tpu.dma_semaphore, #tpu.memory_space<semaphore_mem>> -> memref<1x!tpu.dma_semaphore, #tpu.memory_space<semaphore_mem>>
      %337 = tpu.memref_squeeze %336 : memref<1x!tpu.dma_semaphore, #tpu.memory_space<semaphore_mem>> -> memref<!tpu.dma_semaphore, #tpu.memory_space<semaphore_mem>>
      tpu.wait_dma2 semaphore(%337 : memref<!tpu.dma_semaphore, #tpu.memory_space<semaphore_mem>>) src(%arg3 : memref<128x512xbf16, #tpu.memory_space<any>>) dst(%arg7 : memref<128x512xbf16, #tpu.memory_space<vmem>>)
      %c1_i32_158 = arith.constant 1 : i32
      %338 = tpu.memref_slice %arg11[%c1_i32_158] : memref<2x!tpu.dma_semaphore, #tpu.memory_space<semaphore_mem>> -> memref<1x!tpu.dma_semaphore, #tpu.memory_space<semaphore_mem>>
      %339 = tpu.memref_squeeze %338 : memref<1x!tpu.dma_semaphore, #tpu.memory_space<semaphore_mem>> -> memref<!tpu.dma_semaphore, #tpu.memory_space<semaphore_mem>>
      tpu.wait_dma2 semaphore(%339 : memref<!tpu.dma_semaphore, #tpu.memory_space<semaphore_mem>>) src(%arg4 : memref<128x512xbf16, #tpu.memory_space<any>>) dst(%arg8 : memref<128x512xbf16, #tpu.memory_space<vmem>>)
      %cst_159 = arith.constant 0.000000e+00 : bf16
      %340 = vector.broadcast %cst_159 : bf16 to vector<8x128xbf16>
      %c0_160 = arith.constant 0 : index
      %c0_161 = arith.constant 0 : index
      %341 = vector.load %arg9[%c0_160, %c0_161] : memref<8x128xbf16, #tpu.memory_space<vmem>>, vector<8x128xbf16>
      tpu.vector_store %arg9[%c0_160, %c0_161], %340 {strides = array<i32>} : memref<8x128xbf16, #tpu.memory_space<vmem>>, vector<8x128xbf16>,
      %cst_162 = arith.constant 0.000000e+00 : f32
      %342 = vector.broadcast %cst_162 : f32 to vector<8x128xf32>
      %c0_163 = arith.constant 0 : index
      %c0_164 = arith.constant 0 : index
      %343 = vector.load %arg10[%c0_163, %c0_164] : memref<8x128xf32, #tpu.memory_space<vmem>>, vector<8x128xf32>
      tpu.vector_store %arg10[%c0_163, %c0_164], %342 {strides = array<i32>} : memref<8x128xf32, #tpu.memory_space<vmem>>, vector<8x128xf32>,
    } else {
    }
    %c0 = arith.constant 0 : index
    %c0_1 = arith.constant 0 : index
    %c0_2 = arith.constant 0 : index
    %3 = vector.load %arg1[%c0, %c0_1, %c0_2] : memref<8x8x128xbf16, #tpu.memory_space<vmem>>, vector<8x8x128xbf16>
    %4 = vector.shape_cast %3 : vector<8x8x128xbf16> to vector<64x128xbf16>
    %c0_3 = arith.constant 0 : index
    %c0_4 = arith.constant 0 : index
    %5 = vector.load %arg7[%c0_3, %c0_4] : memref<128x512xbf16, #tpu.memory_space<vmem>>, vector<128x512xbf16>
    %cst = arith.constant dense<0.000000e+00> : vector<64x512xf32>
    %6 = tpu.matmul %4, %5, %cst {dimension_numbers = #tpu.dot_dimension_numbers<[1], [0], [0], [1], [0, 0, 1, 1], [], []>} : vector<64x128xbf16>, vector<128x512xbf16>, vector<64x512xf32> -> vector<64x512xf32>
    %c0_5 = arith.constant 0 : index
    %c0_6 = arith.constant 0 : index
    %7 = vector.load %arg2[%c0_5, %c0_6] : memref<1x512xf32, #tpu.memory_space<vmem>>, vector<1x512xf32>
    %8 = vector.broadcast %7 : vector<1x512xf32> to vector<64x512xf32>
    %9 = arith.addf %6, %8 : vector<64x512xf32>
    %10 = vector.shape_cast %9 : vector<64x512xf32> to vector<8x8x512xf32>
    %c0_7 = arith.constant 0 : index
    %c0_8 = arith.constant 0 : index
    %c0_9 = arith.constant 0 : index
    %11 = vector.load %arg6[%c0_7, %c0_8, %c0_9] : memref<8x8x512xf32, #tpu.memory_space<vmem>>, vector<8x8x512xf32>
    tpu.vector_store %arg6[%c0_7, %c0_8, %c0_9], %10 {strides = array<i32>} : memref<8x8x512xf32, #tpu.memory_space<vmem>>, vector<8x8x512xf32>,
    %c0_i32_10 = arith.constant 0 : i32
    %c0_11 = arith.constant 0 : index
    %c0_12 = arith.constant 0 : index
    %12 = vector.load %arg9[%c0_11, %c0_12] : memref<8x128xbf16, #tpu.memory_space<vmem>>, vector<8x128xbf16>
    %c0_13 = arith.constant 0 : index
    %c0_14 = arith.constant 0 : index
    %13 = vector.load %arg10[%c0_13, %c0_14] : memref<8x128xf32, #tpu.memory_space<vmem>>, vector<8x128xf32>
    %14 = arith.index_cast %c0_i32_10 : i32 to index
    %c0_15 = arith.constant 0 : index
    %c0_16 = arith.constant 0 : index
    %15 = vector.load %arg6[%14, %c0_15, %c0_16] : memref<8x8x512xf32, #tpu.memory_space<vmem>>, vector<1x8x512xf32>
    %16 = vector.shape_cast %15 : vector<1x8x512xf32> to vector<8x512xf32>
    %c0_17 = arith.constant 0 : index
    %c0_18 = arith.constant 0 : index
    %17 = vector.load %arg8[%c0_17, %c0_18] : memref<128x512xbf16, #tpu.memory_space<vmem>>, vector<128x512xbf16>
    %cst_19 = arith.constant dense<0.000000e+00> : vector<8x512xf32>
    %18 = tpu.matmul %12, %17, %cst_19 {dimension_numbers = #tpu.dot_dimension_numbers<[1], [0], [0], [1], [0, 0, 1, 1], [], []>} : vector<8x128xbf16>, vector<128x512xbf16>, vector<8x512xf32> -> vector<8x512xf32>
    %19 = arith.addf %16, %18 : vector<8x512xf32>
    %20 = vector.extract_strided_slice %19 {offsets = [0, 0], sizes = [8, 128], strides = [1, 1]} : vector<8x512xf32> to vector<8x128xf32>
    %21 = arith.negf %20 : vector<8x128xf32>
    %22 = math.exp %21 : vector<8x128xf32>
    %cst_20 = arith.constant 1.000000e+00 : f32
    %23 = vector.broadcast %cst_20 : f32 to vector<8x128xf32>
    %24 = arith.addf %23, %22 : vector<8x128xf32>
    %25 = arith.divf %23, %24 : vector<8x128xf32>
    %26 = vector.extract_strided_slice %19 {offsets = [0, 128], sizes = [8, 128], strides = [1, 1]} : vector<8x512xf32> to vector<8x128xf32>
    %27 = arith.negf %26 : vector<8x128xf32>
    %28 = math.exp %27 : vector<8x128xf32>
    %cst_21 = arith.constant 1.000000e+00 : f32
    %29 = vector.broadcast %cst_21 : f32 to vector<8x128xf32>
    %30 = arith.addf %29, %28 : vector<8x128xf32>
    %31 = arith.divf %29, %30 : vector<8x128xf32>
    %32 = vector.extract_strided_slice %19 {offsets = [0, 256], sizes = [8, 128], strides = [1, 1]} : vector<8x512xf32> to vector<8x128xf32>
    %33 = math.tanh %32 : vector<8x128xf32>
    %34 = vector.extract_strided_slice %19 {offsets = [0, 384], sizes = [8, 128], strides = [1, 1]} : vector<8x512xf32> to vector<8x128xf32>
    %35 = arith.negf %34 : vector<8x128xf32>
    %36 = math.exp %35 : vector<8x128xf32>
    %cst_22 = arith.constant 1.000000e+00 : f32
    %37 = vector.broadcast %cst_22 : f32 to vector<8x128xf32>
    %38 = arith.addf %37, %36 : vector<8x128xf32>
    %39 = arith.divf %37, %38 : vector<8x128xf32>
    %40 = arith.mulf %31, %13 : vector<8x128xf32>
    %41 = arith.mulf %25, %33 : vector<8x128xf32>
    %42 = arith.addf %40, %41 : vector<8x128xf32>
    %43 = math.tanh %42 : vector<8x128xf32>
    %44 = arith.mulf %39, %43 : vector<8x128xf32>
    %c0_23 = arith.constant 0 : index
    %c0_24 = arith.constant 0 : index
    %45 = vector.load %arg10[%c0_23, %c0_24] : memref<8x128xf32, #tpu.memory_space<vmem>>, vector<8x128xf32>
    tpu.vector_store %arg10[%c0_23, %c0_24], %42 {strides = array<i32>} : memref<8x128xf32, #tpu.memory_space<vmem>>, vector<8x128xf32>,
    %46 = arith.truncf %44 : vector<8x128xf32> to vector<8x128xbf16>
    %c0_25 = arith.constant 0 : index
    %c0_26 = arith.constant 0 : index
    %47 = vector.load %arg9[%c0_25, %c0_26] : memref<8x128xbf16, #tpu.memory_space<vmem>>, vector<8x128xbf16>
    tpu.vector_store %arg9[%c0_25, %c0_26], %46 {strides = array<i32>} : memref<8x128xbf16, #tpu.memory_space<vmem>>, vector<8x128xbf16>,
    %48 = arith.index_cast %c0_i32_10 : i32 to index
    %c0_27 = arith.constant 0 : index
    %c0_28 = arith.constant 0 : index
    %49 = vector.load %arg5[%48, %c0_27, %c0_28] : memref<8x8x128xf32, #tpu.memory_space<vmem>>, vector<1x8x128xf32>
    %50 = vector.shape_cast %49 : vector<1x8x128xf32> to vector<8x128xf32>
    %51 = vector.shape_cast %44 : vector<8x128xf32> to vector<1x8x128xf32>
    tpu.vector_store %arg5[%48, %c0_27, %c0_28], %51 {strides = array<i32>} : memref<8x8x128xf32, #tpu.memory_space<vmem>>, vector<1x8x128xf32>,
    %c1_i32 = arith.constant 1 : i32
    %c0_29 = arith.constant 0 : index
    %c0_30 = arith.constant 0 : index
    %52 = vector.load %arg9[%c0_29, %c0_30] : memref<8x128xbf16, #tpu.memory_space<vmem>>, vector<8x128xbf16>
    %c0_31 = arith.constant 0 : index
    %c0_32 = arith.constant 0 : index
    %53 = vector.load %arg10[%c0_31, %c0_32] : memref<8x128xf32, #tpu.memory_space<vmem>>, vector<8x128xf32>
    %54 = arith.index_cast %c1_i32 : i32 to index
    %c0_33 = arith.constant 0 : index
    %c0_34 = arith.constant 0 : index
    %55 = vector.load %arg6[%54, %c0_33, %c0_34] : memref<8x8x512xf32, #tpu.memory_space<vmem>>, vector<1x8x512xf32>
    %56 = vector.shape_cast %55 : vector<1x8x512xf32> to vector<8x512xf32>
    %c0_35 = arith.constant 0 : index
    %c0_36 = arith.constant 0 : index
    %57 = vector.load %arg8[%c0_35, %c0_36] : memref<128x512xbf16, #tpu.memory_space<vmem>>, vector<128x512xbf16>
    %cst_37 = arith.constant dense<0.000000e+00> : vector<8x512xf32>
    %58 = tpu.matmul %52, %57, %cst_37 {dimension_numbers = #tpu.dot_dimension_numbers<[1], [0], [0], [1], [0, 0, 1, 1], [], []>} : vector<8x128xbf16>, vector<128x512xbf16>, vector<8x512xf32> -> vector<8x512xf32>
    %59 = arith.addf %56, %58 : vector<8x512xf32>
    %60 = vector.extract_strided_slice %59 {offsets = [0, 0], sizes = [8, 128], strides = [1, 1]} : vector<8x512xf32> to vector<8x128xf32>
    %61 = arith.negf %60 : vector<8x128xf32>
    %62 = math.exp %61 : vector<8x128xf32>
    %cst_38 = arith.constant 1.000000e+00 : f32
    %63 = vector.broadcast %cst_38 : f32 to vector<8x128xf32>
    %64 = arith.addf %63, %62 : vector<8x128xf32>
    %65 = arith.divf %63, %64 : vector<8x128xf32>
    %66 = vector.extract_strided_slice %59 {offsets = [0, 128], sizes = [8, 128], strides = [1, 1]} : vector<8x512xf32> to vector<8x128xf32>
    %67 = arith.negf %66 : vector<8x128xf32>
    %68 = math.exp %67 : vector<8x128xf32>
    %cst_39 = arith.constant 1.000000e+00 : f32
    %69 = vector.broadcast %cst_39 : f32 to vector<8x128xf32>
    %70 = arith.addf %69, %68 : vector<8x128xf32>
    %71 = arith.divf %69, %70 : vector<8x128xf32>
    %72 = vector.extract_strided_slice %59 {offsets = [0, 256], sizes = [8, 128], strides = [1, 1]} : vector<8x512xf32> to vector<8x128xf32>
    %73 = math.tanh %72 : vector<8x128xf32>
    %74 = vector.extract_strided_slice %59 {offsets = [0, 384], sizes = [8, 128], strides = [1, 1]} : vector<8x512xf32> to vector<8x128xf32>
    %75 = arith.negf %74 : vector<8x128xf32>
    %76 = math.exp %75 : vector<8x128xf32>
    %cst_40 = arith.constant 1.000000e+00 : f32
    %77 = vector.broadcast %cst_40 : f32 to vector<8x128xf32>
    %78 = arith.addf %77, %76 : vector<8x128xf32>
    %79 = arith.divf %77, %78 : vector<8x128xf32>
    %80 = arith.mulf %71, %53 : vector<8x128xf32>
    %81 = arith.mulf %65, %73 : vector<8x128xf32>
    %82 = arith.addf %80, %81 : vector<8x128xf32>
    %83 = math.tanh %82 : vector<8x128xf32>
    %84 = arith.mulf %79, %83 : vector<8x128xf32>
    %c0_41 = arith.constant 0 : index
    %c0_42 = arith.constant 0 : index
    %85 = vector.load %arg10[%c0_41, %c0_42] : memref<8x128xf32, #tpu.memory_space<vmem>>, vector<8x128xf32>
    tpu.vector_store %arg10[%c0_41, %c0_42], %82 {strides = array<i32>} : memref<8x128xf32, #tpu.memory_space<vmem>>, vector<8x128xf32>,
    %86 = arith.truncf %84 : vector<8x128xf32> to vector<8x128xbf16>
    %c0_43 = arith.constant 0 : index
    %c0_44 = arith.constant 0 : index
    %87 = vector.load %arg9[%c0_43, %c0_44] : memref<8x128xbf16, #tpu.memory_space<vmem>>, vector<8x128xbf16>
    tpu.vector_store %arg9[%c0_43, %c0_44], %86 {strides = array<i32>} : memref<8x128xbf16, #tpu.memory_space<vmem>>, vector<8x128xbf16>,
    %88 = arith.index_cast %c1_i32 : i32 to index
    %c0_45 = arith.constant 0 : index
    %c0_46 = arith.constant 0 : index
    %89 = vector.load %arg5[%88, %c0_45, %c0_46] : memref<8x8x128xf32, #tpu.memory_space<vmem>>, vector<1x8x128xf32>
    %90 = vector.shape_cast %89 : vector<1x8x128xf32> to vector<8x128xf32>
    %91 = vector.shape_cast %84 : vector<8x128xf32> to vector<1x8x128xf32>
    tpu.vector_store %arg5[%88, %c0_45, %c0_46], %91 {strides = array<i32>} : memref<8x8x128xf32, #tpu.memory_space<vmem>>, vector<1x8x128xf32>,
    %c2_i32 = arith.constant 2 : i32
    %c0_47 = arith.constant 0 : index
    %c0_48 = arith.constant 0 : index
    %92 = vector.load %arg9[%c0_47, %c0_48] : memref<8x128xbf16, #tpu.memory_space<vmem>>, vector<8x128xbf16>
    %c0_49 = arith.constant 0 : index
    %c0_50 = arith.constant 0 : index
    %93 = vector.load %arg10[%c0_49, %c0_50] : memref<8x128xf32, #tpu.memory_space<vmem>>, vector<8x128xf32>
    %94 = arith.index_cast %c2_i32 : i32 to index
    %c0_51 = arith.constant 0 : index
    %c0_52 = arith.constant 0 : index
    %95 = vector.load %arg6[%94, %c0_51, %c0_52] : memref<8x8x512xf32, #tpu.memory_space<vmem>>, vector<1x8x512xf32>
    %96 = vector.shape_cast %95 : vector<1x8x512xf32> to vector<8x512xf32>
    %c0_53 = arith.constant 0 : index
    %c0_54 = arith.constant 0 : index
    %97 = vector.load %arg8[%c0_53, %c0_54] : memref<128x512xbf16, #tpu.memory_space<vmem>>, vector<128x512xbf16>
    %cst_55 = arith.constant dense<0.000000e+00> : vector<8x512xf32>
    %98 = tpu.matmul %92, %97, %cst_55 {dimension_numbers = #tpu.dot_dimension_numbers<[1], [0], [0], [1], [0, 0, 1, 1], [], []>} : vector<8x128xbf16>, vector<128x512xbf16>, vector<8x512xf32> -> vector<8x512xf32>
    %99 = arith.addf %96, %98 : vector<8x512xf32>
    %100 = vector.extract_strided_slice %99 {offsets = [0, 0], sizes = [8, 128], strides = [1, 1]} : vector<8x512xf32> to vector<8x128xf32>
    %101 = arith.negf %100 : vector<8x128xf32>
    %102 = math.exp %101 : vector<8x128xf32>
    %cst_56 = arith.constant 1.000000e+00 : f32
    %103 = vector.broadcast %cst_56 : f32 to vector<8x128xf32>
    %104 = arith.addf %103, %102 : vector<8x128xf32>
    %105 = arith.divf %103, %104 : vector<8x128xf32>
    %106 = vector.extract_strided_slice %99 {offsets = [0, 128], sizes = [8, 128], strides = [1, 1]} : vector<8x512xf32> to vector<8x128xf32>
    %107 = arith.negf %106 : vector<8x128xf32>
    %108 = math.exp %107 : vector<8x128xf32>
    %cst_57 = arith.constant 1.000000e+00 : f32
    %109 = vector.broadcast %cst_57 : f32 to vector<8x128xf32>
    %110 = arith.addf %109, %108 : vector<8x128xf32>
    %111 = arith.divf %109, %110 : vector<8x128xf32>
    %112 = vector.extract_strided_slice %99 {offsets = [0, 256], sizes = [8, 128], strides = [1, 1]} : vector<8x512xf32> to vector<8x128xf32>
    %113 = math.tanh %112 : vector<8x128xf32>
    %114 = vector.extract_strided_slice %99 {offsets = [0, 384], sizes = [8, 128], strides = [1, 1]} : vector<8x512xf32> to vector<8x128xf32>
    %115 = arith.negf %114 : vector<8x128xf32>
    %116 = math.exp %115 : vector<8x128xf32>
    %cst_58 = arith.constant 1.000000e+00 : f32
    %117 = vector.broadcast %cst_58 : f32 to vector<8x128xf32>
    %118 = arith.addf %117, %116 : vector<8x128xf32>
    %119 = arith.divf %117, %118 : vector<8x128xf32>
    %120 = arith.mulf %111, %93 : vector<8x128xf32>
    %121 = arith.mulf %105, %113 : vector<8x128xf32>
    %122 = arith.addf %120, %121 : vector<8x128xf32>
    %123 = math.tanh %122 : vector<8x128xf32>
    %124 = arith.mulf %119, %123 : vector<8x128xf32>
    %c0_59 = arith.constant 0 : index
    %c0_60 = arith.constant 0 : index
    %125 = vector.load %arg10[%c0_59, %c0_60] : memref<8x128xf32, #tpu.memory_space<vmem>>, vector<8x128xf32>
    tpu.vector_store %arg10[%c0_59, %c0_60], %122 {strides = array<i32>} : memref<8x128xf32, #tpu.memory_space<vmem>>, vector<8x128xf32>,
    %126 = arith.truncf %124 : vector<8x128xf32> to vector<8x128xbf16>
    %c0_61 = arith.constant 0 : index
    %c0_62 = arith.constant 0 : index
    %127 = vector.load %arg9[%c0_61, %c0_62] : memref<8x128xbf16, #tpu.memory_space<vmem>>, vector<8x128xbf16>
    tpu.vector_store %arg9[%c0_61, %c0_62], %126 {strides = array<i32>} : memref<8x128xbf16, #tpu.memory_space<vmem>>, vector<8x128xbf16>,
    %128 = arith.index_cast %c2_i32 : i32 to index
    %c0_63 = arith.constant 0 : index
    %c0_64 = arith.constant 0 : index
    %129 = vector.load %arg5[%128, %c0_63, %c0_64] : memref<8x8x128xf32, #tpu.memory_space<vmem>>, vector<1x8x128xf32>
    %130 = vector.shape_cast %129 : vector<1x8x128xf32> to vector<8x128xf32>
    %131 = vector.shape_cast %124 : vector<8x128xf32> to vector<1x8x128xf32>
    tpu.vector_store %arg5[%128, %c0_63, %c0_64], %131 {strides = array<i32>} : memref<8x8x128xf32, #tpu.memory_space<vmem>>, vector<1x8x128xf32>,
    %c3_i32 = arith.constant 3 : i32
    %c0_65 = arith.constant 0 : index
    %c0_66 = arith.constant 0 : index
    %132 = vector.load %arg9[%c0_65, %c0_66] : memref<8x128xbf16, #tpu.memory_space<vmem>>, vector<8x128xbf16>
    %c0_67 = arith.constant 0 : index
    %c0_68 = arith.constant 0 : index
    %133 = vector.load %arg10[%c0_67, %c0_68] : memref<8x128xf32, #tpu.memory_space<vmem>>, vector<8x128xf32>
    %134 = arith.index_cast %c3_i32 : i32 to index
    %c0_69 = arith.constant 0 : index
    %c0_70 = arith.constant 0 : index
    %135 = vector.load %arg6[%134, %c0_69, %c0_70] : memref<8x8x512xf32, #tpu.memory_space<vmem>>, vector<1x8x512xf32>
    %136 = vector.shape_cast %135 : vector<1x8x512xf32> to vector<8x512xf32>
    %c0_71 = arith.constant 0 : index
    %c0_72 = arith.constant 0 : index
    %137 = vector.load %arg8[%c0_71, %c0_72] : memref<128x512xbf16, #tpu.memory_space<vmem>>, vector<128x512xbf16>
    %cst_73 = arith.constant dense<0.000000e+00> : vector<8x512xf32>
    %138 = tpu.matmul %132, %137, %cst_73 {dimension_numbers = #tpu.dot_dimension_numbers<[1], [0], [0], [1], [0, 0, 1, 1], [], []>} : vector<8x128xbf16>, vector<128x512xbf16>, vector<8x512xf32> -> vector<8x512xf32>
    %139 = arith.addf %136, %138 : vector<8x512xf32>
    %140 = vector.extract_strided_slice %139 {offsets = [0, 0], sizes = [8, 128], strides = [1, 1]} : vector<8x512xf32> to vector<8x128xf32>
    %141 = arith.negf %140 : vector<8x128xf32>
    %142 = math.exp %141 : vector<8x128xf32>
    %cst_74 = arith.constant 1.000000e+00 : f32
    %143 = vector.broadcast %cst_74 : f32 to vector<8x128xf32>
    %144 = arith.addf %143, %142 : vector<8x128xf32>
    %145 = arith.divf %143, %144 : vector<8x128xf32>
    %146 = vector.extract_strided_slice %139 {offsets = [0, 128], sizes = [8, 128], strides = [1, 1]} : vector<8x512xf32> to vector<8x128xf32>
    %147 = arith.negf %146 : vector<8x128xf32>
    %148 = math.exp %147 : vector<8x128xf32>
    %cst_75 = arith.constant 1.000000e+00 : f32
    %149 = vector.broadcast %cst_75 : f32 to vector<8x128xf32>
    %150 = arith.addf %149, %148 : vector<8x128xf32>
    %151 = arith.divf %149, %150 : vector<8x128xf32>
    %152 = vector.extract_strided_slice %139 {offsets = [0, 256], sizes = [8, 128], strides = [1, 1]} : vector<8x512xf32> to vector<8x128xf32>
    %153 = math.tanh %152 : vector<8x128xf32>
    %154 = vector.extract_strided_slice %139 {offsets = [0, 384], sizes = [8, 128], strides = [1, 1]} : vector<8x512xf32> to vector<8x128xf32>
    %155 = arith.negf %154 : vector<8x128xf32>
    %156 = math.exp %155 : vector<8x128xf32>
    %cst_76 = arith.constant 1.000000e+00 : f32
    %157 = vector.broadcast %cst_76 : f32 to vector<8x128xf32>
    %158 = arith.addf %157, %156 : vector<8x128xf32>
    %159 = arith.divf %157, %158 : vector<8x128xf32>
    %160 = arith.mulf %151, %133 : vector<8x128xf32>
    %161 = arith.mulf %145, %153 : vector<8x128xf32>
    %162 = arith.addf %160, %161 : vector<8x128xf32>
    %163 = math.tanh %162 : vector<8x128xf32>
    %164 = arith.mulf %159, %163 : vector<8x128xf32>
    %c0_77 = arith.constant 0 : index
    %c0_78 = arith.constant 0 : index
    %165 = vector.load %arg10[%c0_77, %c0_78] : memref<8x128xf32, #tpu.memory_space<vmem>>, vector<8x128xf32>
    tpu.vector_store %arg10[%c0_77, %c0_78], %162 {strides = array<i32>} : memref<8x128xf32, #tpu.memory_space<vmem>>, vector<8x128xf32>,
    %166 = arith.truncf %164 : vector<8x128xf32> to vector<8x128xbf16>
    %c0_79 = arith.constant 0 : index
    %c0_80 = arith.constant 0 : index
    %167 = vector.load %arg9[%c0_79, %c0_80] : memref<8x128xbf16, #tpu.memory_space<vmem>>, vector<8x128xbf16>
    tpu.vector_store %arg9[%c0_79, %c0_80], %166 {strides = array<i32>} : memref<8x128xbf16, #tpu.memory_space<vmem>>, vector<8x128xbf16>,
    %168 = arith.index_cast %c3_i32 : i32 to index
    %c0_81 = arith.constant 0 : index
    %c0_82 = arith.constant 0 : index
    %169 = vector.load %arg5[%168, %c0_81, %c0_82] : memref<8x8x128xf32, #tpu.memory_space<vmem>>, vector<1x8x128xf32>
    %170 = vector.shape_cast %169 : vector<1x8x128xf32> to vector<8x128xf32>
    %171 = vector.shape_cast %164 : vector<8x128xf32> to vector<1x8x128xf32>
    tpu.vector_store %arg5[%168, %c0_81, %c0_82], %171 {strides = array<i32>} : memref<8x8x128xf32, #tpu.memory_space<vmem>>, vector<1x8x128xf32>,
    %c4_i32 = arith.constant 4 : i32
    %c0_83 = arith.constant 0 : index
    %c0_84 = arith.constant 0 : index
    %172 = vector.load %arg9[%c0_83, %c0_84] : memref<8x128xbf16, #tpu.memory_space<vmem>>, vector<8x128xbf16>
    %c0_85 = arith.constant 0 : index
    %c0_86 = arith.constant 0 : index
    %173 = vector.load %arg10[%c0_85, %c0_86] : memref<8x128xf32, #tpu.memory_space<vmem>>, vector<8x128xf32>
    %174 = arith.index_cast %c4_i32 : i32 to index
    %c0_87 = arith.constant 0 : index
    %c0_88 = arith.constant 0 : index
    %175 = vector.load %arg6[%174, %c0_87, %c0_88] : memref<8x8x512xf32, #tpu.memory_space<vmem>>, vector<1x8x512xf32>
    %176 = vector.shape_cast %175 : vector<1x8x512xf32> to vector<8x512xf32>
    %c0_89 = arith.constant 0 : index
    %c0_90 = arith.constant 0 : index
    %177 = vector.load %arg8[%c0_89, %c0_90] : memref<128x512xbf16, #tpu.memory_space<vmem>>, vector<128x512xbf16>
    %cst_91 = arith.constant dense<0.000000e+00> : vector<8x512xf32>
    %178 = tpu.matmul %172, %177, %cst_91 {dimension_numbers = #tpu.dot_dimension_numbers<[1], [0], [0], [1], [0, 0, 1, 1], [], []>} : vector<8x128xbf16>, vector<128x512xbf16>, vector<8x512xf32> -> vector<8x512xf32>
    %179 = arith.addf %176, %178 : vector<8x512xf32>
    %180 = vector.extract_strided_slice %179 {offsets = [0, 0], sizes = [8, 128], strides = [1, 1]} : vector<8x512xf32> to vector<8x128xf32>
    %181 = arith.negf %180 : vector<8x128xf32>
    %182 = math.exp %181 : vector<8x128xf32>
    %cst_92 = arith.constant 1.000000e+00 : f32
    %183 = vector.broadcast %cst_92 : f32 to vector<8x128xf32>
    %184 = arith.addf %183, %182 : vector<8x128xf32>
    %185 = arith.divf %183, %184 : vector<8x128xf32>
    %186 = vector.extract_strided_slice %179 {offsets = [0, 128], sizes = [8, 128], strides = [1, 1]} : vector<8x512xf32> to vector<8x128xf32>
    %187 = arith.negf %186 : vector<8x128xf32>
    %188 = math.exp %187 : vector<8x128xf32>
    %cst_93 = arith.constant 1.000000e+00 : f32
    %189 = vector.broadcast %cst_93 : f32 to vector<8x128xf32>
    %190 = arith.addf %189, %188 : vector<8x128xf32>
    %191 = arith.divf %189, %190 : vector<8x128xf32>
    %192 = vector.extract_strided_slice %179 {offsets = [0, 256], sizes = [8, 128], strides = [1, 1]} : vector<8x512xf32> to vector<8x128xf32>
    %193 = math.tanh %192 : vector<8x128xf32>
    %194 = vector.extract_strided_slice %179 {offsets = [0, 384], sizes = [8, 128], strides = [1, 1]} : vector<8x512xf32> to vector<8x128xf32>
    %195 = arith.negf %194 : vector<8x128xf32>
    %196 = math.exp %195 : vector<8x128xf32>
    %cst_94 = arith.constant 1.000000e+00 : f32
    %197 = vector.broadcast %cst_94 : f32 to vector<8x128xf32>
    %198 = arith.addf %197, %196 : vector<8x128xf32>
    %199 = arith.divf %197, %198 : vector<8x128xf32>
    %200 = arith.mulf %191, %173 : vector<8x128xf32>
    %201 = arith.mulf %185, %193 : vector<8x128xf32>
    %202 = arith.addf %200, %201 : vector<8x128xf32>
    %203 = math.tanh %202 : vector<8x128xf32>
    %204 = arith.mulf %199, %203 : vector<8x128xf32>
    %c0_95 = arith.constant 0 : index
    %c0_96 = arith.constant 0 : index
    %205 = vector.load %arg10[%c0_95, %c0_96] : memref<8x128xf32, #tpu.memory_space<vmem>>, vector<8x128xf32>
    tpu.vector_store %arg10[%c0_95, %c0_96], %202 {strides = array<i32>} : memref<8x128xf32, #tpu.memory_space<vmem>>, vector<8x128xf32>,
    %206 = arith.truncf %204 : vector<8x128xf32> to vector<8x128xbf16>
    %c0_97 = arith.constant 0 : index
    %c0_98 = arith.constant 0 : index
    %207 = vector.load %arg9[%c0_97, %c0_98] : memref<8x128xbf16, #tpu.memory_space<vmem>>, vector<8x128xbf16>
    tpu.vector_store %arg9[%c0_97, %c0_98], %206 {strides = array<i32>} : memref<8x128xbf16, #tpu.memory_space<vmem>>, vector<8x128xbf16>,
    %208 = arith.index_cast %c4_i32 : i32 to index
    %c0_99 = arith.constant 0 : index
    %c0_100 = arith.constant 0 : index
    %209 = vector.load %arg5[%208, %c0_99, %c0_100] : memref<8x8x128xf32, #tpu.memory_space<vmem>>, vector<1x8x128xf32>
    %210 = vector.shape_cast %209 : vector<1x8x128xf32> to vector<8x128xf32>
    %211 = vector.shape_cast %204 : vector<8x128xf32> to vector<1x8x128xf32>
    tpu.vector_store %arg5[%208, %c0_99, %c0_100], %211 {strides = array<i32>} : memref<8x8x128xf32, #tpu.memory_space<vmem>>, vector<1x8x128xf32>,
    %c5_i32 = arith.constant 5 : i32
    %c0_101 = arith.constant 0 : index
    %c0_102 = arith.constant 0 : index
    %212 = vector.load %arg9[%c0_101, %c0_102] : memref<8x128xbf16, #tpu.memory_space<vmem>>, vector<8x128xbf16>
    %c0_103 = arith.constant 0 : index
    %c0_104 = arith.constant 0 : index
    %213 = vector.load %arg10[%c0_103, %c0_104] : memref<8x128xf32, #tpu.memory_space<vmem>>, vector<8x128xf32>
    %214 = arith.index_cast %c5_i32 : i32 to index
    %c0_105 = arith.constant 0 : index
    %c0_106 = arith.constant 0 : index
    %215 = vector.load %arg6[%214, %c0_105, %c0_106] : memref<8x8x512xf32, #tpu.memory_space<vmem>>, vector<1x8x512xf32>
    %216 = vector.shape_cast %215 : vector<1x8x512xf32> to vector<8x512xf32>
    %c0_107 = arith.constant 0 : index
    %c0_108 = arith.constant 0 : index
    %217 = vector.load %arg8[%c0_107, %c0_108] : memref<128x512xbf16, #tpu.memory_space<vmem>>, vector<128x512xbf16>
    %cst_109 = arith.constant dense<0.000000e+00> : vector<8x512xf32>
    %218 = tpu.matmul %212, %217, %cst_109 {dimension_numbers = #tpu.dot_dimension_numbers<[1], [0], [0], [1], [0, 0, 1, 1], [], []>} : vector<8x128xbf16>, vector<128x512xbf16>, vector<8x512xf32> -> vector<8x512xf32>
    %219 = arith.addf %216, %218 : vector<8x512xf32>
    %220 = vector.extract_strided_slice %219 {offsets = [0, 0], sizes = [8, 128], strides = [1, 1]} : vector<8x512xf32> to vector<8x128xf32>
    %221 = arith.negf %220 : vector<8x128xf32>
    %222 = math.exp %221 : vector<8x128xf32>
    %cst_110 = arith.constant 1.000000e+00 : f32
    %223 = vector.broadcast %cst_110 : f32 to vector<8x128xf32>
    %224 = arith.addf %223, %222 : vector<8x128xf32>
    %225 = arith.divf %223, %224 : vector<8x128xf32>
    %226 = vector.extract_strided_slice %219 {offsets = [0, 128], sizes = [8, 128], strides = [1, 1]} : vector<8x512xf32> to vector<8x128xf32>
    %227 = arith.negf %226 : vector<8x128xf32>
    %228 = math.exp %227 : vector<8x128xf32>
    %cst_111 = arith.constant 1.000000e+00 : f32
    %229 = vector.broadcast %cst_111 : f32 to vector<8x128xf32>
    %230 = arith.addf %229, %228 : vector<8x128xf32>
    %231 = arith.divf %229, %230 : vector<8x128xf32>
    %232 = vector.extract_strided_slice %219 {offsets = [0, 256], sizes = [8, 128], strides = [1, 1]} : vector<8x512xf32> to vector<8x128xf32>
    %233 = math.tanh %232 : vector<8x128xf32>
    %234 = vector.extract_strided_slice %219 {offsets = [0, 384], sizes = [8, 128], strides = [1, 1]} : vector<8x512xf32> to vector<8x128xf32>
    %235 = arith.negf %234 : vector<8x128xf32>
    %236 = math.exp %235 : vector<8x128xf32>
    %cst_112 = arith.constant 1.000000e+00 : f32
    %237 = vector.broadcast %cst_112 : f32 to vector<8x128xf32>
    %238 = arith.addf %237, %236 : vector<8x128xf32>
    %239 = arith.divf %237, %238 : vector<8x128xf32>
    %240 = arith.mulf %231, %213 : vector<8x128xf32>
    %241 = arith.mulf %225, %233 : vector<8x128xf32>
    %242 = arith.addf %240, %241 : vector<8x128xf32>
    %243 = math.tanh %242 : vector<8x128xf32>
    %244 = arith.mulf %239, %243 : vector<8x128xf32>
    %c0_113 = arith.constant 0 : index
    %c0_114 = arith.constant 0 : index
    %245 = vector.load %arg10[%c0_113, %c0_114] : memref<8x128xf32, #tpu.memory_space<vmem>>, vector<8x128xf32>
    tpu.vector_store %arg10[%c0_113, %c0_114], %242 {strides = array<i32>} : memref<8x128xf32, #tpu.memory_space<vmem>>, vector<8x128xf32>,
    %246 = arith.truncf %244 : vector<8x128xf32> to vector<8x128xbf16>
    %c0_115 = arith.constant 0 : index
    %c0_116 = arith.constant 0 : index
    %247 = vector.load %arg9[%c0_115, %c0_116] : memref<8x128xbf16, #tpu.memory_space<vmem>>, vector<8x128xbf16>
    tpu.vector_store %arg9[%c0_115, %c0_116], %246 {strides = array<i32>} : memref<8x128xbf16, #tpu.memory_space<vmem>>, vector<8x128xbf16>,
    %248 = arith.index_cast %c5_i32 : i32 to index
    %c0_117 = arith.constant 0 : index
    %c0_118 = arith.constant 0 : index
    %249 = vector.load %arg5[%248, %c0_117, %c0_118] : memref<8x8x128xf32, #tpu.memory_space<vmem>>, vector<1x8x128xf32>
    %250 = vector.shape_cast %249 : vector<1x8x128xf32> to vector<8x128xf32>
    %251 = vector.shape_cast %244 : vector<8x128xf32> to vector<1x8x128xf32>
    tpu.vector_store %arg5[%248, %c0_117, %c0_118], %251 {strides = array<i32>} : memref<8x8x128xf32, #tpu.memory_space<vmem>>, vector<1x8x128xf32>,
    %c6_i32 = arith.constant 6 : i32
    %c0_119 = arith.constant 0 : index
    %c0_120 = arith.constant 0 : index
    %252 = vector.load %arg9[%c0_119, %c0_120] : memref<8x128xbf16, #tpu.memory_space<vmem>>, vector<8x128xbf16>
    %c0_121 = arith.constant 0 : index
    %c0_122 = arith.constant 0 : index
    %253 = vector.load %arg10[%c0_121, %c0_122] : memref<8x128xf32, #tpu.memory_space<vmem>>, vector<8x128xf32>
    %254 = arith.index_cast %c6_i32 : i32 to index
    %c0_123 = arith.constant 0 : index
    %c0_124 = arith.constant 0 : index
    %255 = vector.load %arg6[%254, %c0_123, %c0_124] : memref<8x8x512xf32, #tpu.memory_space<vmem>>, vector<1x8x512xf32>
    %256 = vector.shape_cast %255 : vector<1x8x512xf32> to vector<8x512xf32>
    %c0_125 = arith.constant 0 : index
    %c0_126 = arith.constant 0 : index
    %257 = vector.load %arg8[%c0_125, %c0_126] : memref<128x512xbf16, #tpu.memory_space<vmem>>, vector<128x512xbf16>
    %cst_127 = arith.constant dense<0.000000e+00> : vector<8x512xf32>
    %258 = tpu.matmul %252, %257, %cst_127 {dimension_numbers = #tpu.dot_dimension_numbers<[1], [0], [0], [1], [0, 0, 1, 1], [], []>} : vector<8x128xbf16>, vector<128x512xbf16>, vector<8x512xf32> -> vector<8x512xf32>
    %259 = arith.addf %256, %258 : vector<8x512xf32>
    %260 = vector.extract_strided_slice %259 {offsets = [0, 0], sizes = [8, 128], strides = [1, 1]} : vector<8x512xf32> to vector<8x128xf32>
    %261 = arith.negf %260 : vector<8x128xf32>
    %262 = math.exp %261 : vector<8x128xf32>
    %cst_128 = arith.constant 1.000000e+00 : f32
    %263 = vector.broadcast %cst_128 : f32 to vector<8x128xf32>
    %264 = arith.addf %263, %262 : vector<8x128xf32>
    %265 = arith.divf %263, %264 : vector<8x128xf32>
    %266 = vector.extract_strided_slice %259 {offsets = [0, 128], sizes = [8, 128], strides = [1, 1]} : vector<8x512xf32> to vector<8x128xf32>
    %267 = arith.negf %266 : vector<8x128xf32>
    %268 = math.exp %267 : vector<8x128xf32>
    %cst_129 = arith.constant 1.000000e+00 : f32
    %269 = vector.broadcast %cst_129 : f32 to vector<8x128xf32>
    %270 = arith.addf %269, %268 : vector<8x128xf32>
    %271 = arith.divf %269, %270 : vector<8x128xf32>
    %272 = vector.extract_strided_slice %259 {offsets = [0, 256], sizes = [8, 128], strides = [1, 1]} : vector<8x512xf32> to vector<8x128xf32>
    %273 = math.tanh %272 : vector<8x128xf32>
    %274 = vector.extract_strided_slice %259 {offsets = [0, 384], sizes = [8, 128], strides = [1, 1]} : vector<8x512xf32> to vector<8x128xf32>
    %275 = arith.negf %274 : vector<8x128xf32>
    %276 = math.exp %275 : vector<8x128xf32>
    %cst_130 = arith.constant 1.000000e+00 : f32
    %277 = vector.broadcast %cst_130 : f32 to vector<8x128xf32>
    %278 = arith.addf %277, %276 : vector<8x128xf32>
    %279 = arith.divf %277, %278 : vector<8x128xf32>
    %280 = arith.mulf %271, %253 : vector<8x128xf32>
    %281 = arith.mulf %265, %273 : vector<8x128xf32>
    %282 = arith.addf %280, %281 : vector<8x128xf32>
    %283 = math.tanh %282 : vector<8x128xf32>
    %284 = arith.mulf %279, %283 : vector<8x128xf32>
    %c0_131 = arith.constant 0 : index
    %c0_132 = arith.constant 0 : index
    %285 = vector.load %arg10[%c0_131, %c0_132] : memref<8x128xf32, #tpu.memory_space<vmem>>, vector<8x128xf32>
    tpu.vector_store %arg10[%c0_131, %c0_132], %282 {strides = array<i32>} : memref<8x128xf32, #tpu.memory_space<vmem>>, vector<8x128xf32>,
    %286 = arith.truncf %284 : vector<8x128xf32> to vector<8x128xbf16>
    %c0_133 = arith.constant 0 : index
    %c0_134 = arith.constant 0 : index
    %287 = vector.load %arg9[%c0_133, %c0_134] : memref<8x128xbf16, #tpu.memory_space<vmem>>, vector<8x128xbf16>
    tpu.vector_store %arg9[%c0_133, %c0_134], %286 {strides = array<i32>} : memref<8x128xbf16, #tpu.memory_space<vmem>>, vector<8x128xbf16>,
    %288 = arith.index_cast %c6_i32 : i32 to index
    %c0_135 = arith.constant 0 : index
    %c0_136 = arith.constant 0 : index
    %289 = vector.load %arg5[%288, %c0_135, %c0_136] : memref<8x8x128xf32, #tpu.memory_space<vmem>>, vector<1x8x128xf32>
    %290 = vector.shape_cast %289 : vector<1x8x128xf32> to vector<8x128xf32>
    %291 = vector.shape_cast %284 : vector<8x128xf32> to vector<1x8x128xf32>
    tpu.vector_store %arg5[%288, %c0_135, %c0_136], %291 {strides = array<i32>} : memref<8x8x128xf32, #tpu.memory_space<vmem>>, vector<1x8x128xf32>,
    %c7_i32 = arith.constant 7 : i32
    %c0_137 = arith.constant 0 : index
    %c0_138 = arith.constant 0 : index
    %292 = vector.load %arg9[%c0_137, %c0_138] : memref<8x128xbf16, #tpu.memory_space<vmem>>, vector<8x128xbf16>
    %c0_139 = arith.constant 0 : index
    %c0_140 = arith.constant 0 : index
    %293 = vector.load %arg10[%c0_139, %c0_140] : memref<8x128xf32, #tpu.memory_space<vmem>>, vector<8x128xf32>
    %294 = arith.index_cast %c7_i32 : i32 to index
    %c0_141 = arith.constant 0 : index
    %c0_142 = arith.constant 0 : index
    %295 = vector.load %arg6[%294, %c0_141, %c0_142] : memref<8x8x512xf32, #tpu.memory_space<vmem>>, vector<1x8x512xf32>
    %296 = vector.shape_cast %295 : vector<1x8x512xf32> to vector<8x512xf32>
    %c0_143 = arith.constant 0 : index
    %c0_144 = arith.constant 0 : index
    %297 = vector.load %arg8[%c0_143, %c0_144] : memref<128x512xbf16, #tpu.memory_space<vmem>>, vector<128x512xbf16>
    %cst_145 = arith.constant dense<0.000000e+00> : vector<8x512xf32>
    %298 = tpu.matmul %292, %297, %cst_145 {dimension_numbers = #tpu.dot_dimension_numbers<[1], [0], [0], [1], [0, 0, 1, 1], [], []>} : vector<8x128xbf16>, vector<128x512xbf16>, vector<8x512xf32> -> vector<8x512xf32>
    %299 = arith.addf %296, %298 : vector<8x512xf32>
    %300 = vector.extract_strided_slice %299 {offsets = [0, 0], sizes = [8, 128], strides = [1, 1]} : vector<8x512xf32> to vector<8x128xf32>
    %301 = arith.negf %300 : vector<8x128xf32>
    %302 = math.exp %301 : vector<8x128xf32>
    %cst_146 = arith.constant 1.000000e+00 : f32
    %303 = vector.broadcast %cst_146 : f32 to vector<8x128xf32>
    %304 = arith.addf %303, %302 : vector<8x128xf32>
    %305 = arith.divf %303, %304 : vector<8x128xf32>
    %306 = vector.extract_strided_slice %299 {offsets = [0, 128], sizes = [8, 128], strides = [1, 1]} : vector<8x512xf32> to vector<8x128xf32>
    %307 = arith.negf %306 : vector<8x128xf32>
    %308 = math.exp %307 : vector<8x128xf32>
    %cst_147 = arith.constant 1.000000e+00 : f32
    %309 = vector.broadcast %cst_147 : f32 to vector<8x128xf32>
    %310 = arith.addf %309, %308 : vector<8x128xf32>
    %311 = arith.divf %309, %310 : vector<8x128xf32>
    %312 = vector.extract_strided_slice %299 {offsets = [0, 256], sizes = [8, 128], strides = [1, 1]} : vector<8x512xf32> to vector<8x128xf32>
    %313 = math.tanh %312 : vector<8x128xf32>
    %314 = vector.extract_strided_slice %299 {offsets = [0, 384], sizes = [8, 128], strides = [1, 1]} : vector<8x512xf32> to vector<8x128xf32>
    %315 = arith.negf %314 : vector<8x128xf32>
    %316 = math.exp %315 : vector<8x128xf32>
    %cst_148 = arith.constant 1.000000e+00 : f32
    %317 = vector.broadcast %cst_148 : f32 to vector<8x128xf32>
    %318 = arith.addf %317, %316 : vector<8x128xf32>
    %319 = arith.divf %317, %318 : vector<8x128xf32>
    %320 = arith.mulf %311, %293 : vector<8x128xf32>
    %321 = arith.mulf %305, %313 : vector<8x128xf32>
    %322 = arith.addf %320, %321 : vector<8x128xf32>
    %323 = math.tanh %322 : vector<8x128xf32>
    %324 = arith.mulf %319, %323 : vector<8x128xf32>
    %c0_149 = arith.constant 0 : index
    %c0_150 = arith.constant 0 : index
    %325 = vector.load %arg10[%c0_149, %c0_150] : memref<8x128xf32, #tpu.memory_space<vmem>>, vector<8x128xf32>
    tpu.vector_store %arg10[%c0_149, %c0_150], %322 {strides = array<i32>} : memref<8x128xf32, #tpu.memory_space<vmem>>, vector<8x128xf32>,
    %326 = arith.truncf %324 : vector<8x128xf32> to vector<8x128xbf16>
    %c0_151 = arith.constant 0 : index
    %c0_152 = arith.constant 0 : index
    %327 = vector.load %arg9[%c0_151, %c0_152] : memref<8x128xbf16, #tpu.memory_space<vmem>>, vector<8x128xbf16>
    tpu.vector_store %arg9[%c0_151, %c0_152], %326 {strides = array<i32>} : memref<8x128xbf16, #tpu.memory_space<vmem>>, vector<8x128xbf16>,
    %328 = arith.index_cast %c7_i32 : i32 to index
    %c0_153 = arith.constant 0 : index
    %c0_154 = arith.constant 0 : index
    %329 = vector.load %arg5[%328, %c0_153, %c0_154] : memref<8x8x128xf32, #tpu.memory_space<vmem>>, vector<1x8x128xf32>
    %330 = vector.shape_cast %329 : vector<1x8x128xf32> to vector<8x128xf32>
    %331 = vector.shape_cast %324 : vector<8x128xf32> to vector<1x8x128xf32>
    tpu.vector_store %arg5[%328, %c0_153, %c0_154], %331 {strides = array<i32>} : memref<8x8x128xf32, #tpu.memory_space<vmem>>, vector<1x8x128xf32>,
    %c8_i32 = arith.constant 8 : i32
    return
  }
  func.func @transform_0(%arg0: i32) -> (i32, i32, i32) {
    %c0_i32 = arith.constant 0 : i32
    %c0_i32_0 = arith.constant 0 : i32
    %c0_i32_1 = arith.constant 0 : i32
    return %arg0, %c0_i32, %c0_i32_0 : i32, i32, i32
  }
  func.func @transform_1(%arg0: i32) -> (i32, i32) {
    %c0_i32 = arith.constant 0 : i32
    %c0_i32_0 = arith.constant 0 : i32
    %c0_i32_1 = arith.constant 0 : i32
    return %c0_i32, %c0_i32_0 : i32, i32
  }
  func.func @transform_4(%arg0: i32) -> (i32, i32, i32) {
    %c0_i32 = arith.constant 0 : i32
    %c0_i32_0 = arith.constant 0 : i32
    %c0_i32_1 = arith.constant 0 : i32
    return %arg0, %c0_i32, %c0_i32_0 : i32, i32, i32
  }
}

</mosaic_0001>

<bundles_post_ra>
// kernel: tpu_custom_call.1
= control target key start
LH: loop header
LB: loop body
LE: loop exit
PB: predicated region body
PF: predicated region fallthrough
CT: control target
= control target key end

     0   :  { %9 = vsyncpa [#allocation9], 0  ;;  %s4354_s0 = inlined_call_operand.hbm [shape: bf16[8,8,128], index: 0, kind: input, shape index: {}]   ;;  %s4355_s1 = inlined_call_operand.hbm [shape: f32[1,512], index: 1, kind: input, shape index: {}]   ;;  %s4356_s2 = inlined_call_operand.hbm [shape: bf16[128,512], index: 2, kind: input, shape index: {}]   ;;  %s4357_s3 = inlined_call_operand.hbm [shape: bf16[128,512], index: 3, kind: input, shape index: {}]   ;;  %s4358_s4 = inlined_call_operand.hbm [shape: f32[8,8,128], index: 4, kind: output, shape index: {}]  }
   0x1   :  { %10 = vsyncpa [#allocation12], 0 }
   0x2   :  { %11 = vsyncpa [#allocation10], 0  ;;  %s3755_s15 = smov [#allocation8]  }
   0x3   :  { %s17_s16 = sshll.u32 %s3755_s15, 4  ;;  %s18_s16 = int_to_ptr.vmem [resolvable:$true] %s17_s16 }
   0x4   :  { %s3653_s17 = scalar_lea.vmem %s18_s16, 512  ;;  %p3658_p1 = scmp.lt.s32.totalorder %s18_s16, %s18_s16 }
   0x5   :  { %p3654_p0 = scmp.ne.s32.totalorder %s18_s16, %s3653_s17  ;;  %p3659_p2 = scmp.lt.s32.totalorder %s3653_s17, %s3653_s17 }
   0x7   :  { %p3660_p3 = por %p3659_p2, %p3658_p1 }
   0x9   :  { %p3661_p4 = pnand %p3660_p3, %p3654_p0 }
   0xb   :  { %3664 = shalt.err (!%p3661_p4)
}
   0xc   :  { %s3756_s18 = smov 64   ;;  %s3757_s19 = smov 4  }
   0xd   :  { %23 = dma.hbm_to_vmem [thread:$0]  %s4354_s0, 512, %s18_s16, [#allocation9], %s3756_s18, %s3756_s18, %s3757_s19  }
   0xe   :  { %s3758_s22 = smov [#allocation11]  }
   0xf   :  { %s30_s23 = sshll.u32 %s3758_s22, 4  ;;  %s31_s23 = int_to_ptr.vmem [resolvable:$true] %s30_s23 }
  0x10   :  { %s3673_s24 = scalar_lea.vmem %s31_s23, 64  ;;  %p3678_p6 = scmp.lt.s32.totalorder %s31_s23, %s31_s23 }
  0x11   :  { %p3674_p5 = scmp.ne.s32.totalorder %s31_s23, %s3673_s24  ;;  %p3679_p7 = scmp.lt.s32.totalorder %s3673_s24, %s3673_s24 }
  0x13   :  { %p3680_p8 = por %p3679_p7, %p3678_p6 }
  0x15   :  { %p3681_p9 = pnand %p3680_p8, %p3674_p5 }
  0x17   :  { %3684 = shalt.err (!%p3681_p9)
}
  0x18   :  { %33 = dma.hbm_to_vmem [thread:$0]  %s4355_s1, 64, %s31_s23, [#allocation12]  }
  0x19   :  { %3745 = dma.done.wait [#allocation9], 512  }
  0x1a   :  { %3746 = vsyncadd [#allocation9], 4294966784 }
  0x1b   :  { %3747 = dma.done.wait [#allocation12], 64  }
  0x1c   :  { %3748 = vsyncadd [#allocation12], 4294967232  ;;  %s3759_s27 = smov [#allocation3]   ;;  %s3760_s28 = smov [#allocation4]  }
  0x1d   :  { %s52_s0 = sshll.u32 %s3759_s27, 4  ;;  %s64_s29 = sshll.u32 %s3760_s28, 4  ;;  %s53_s0 = int_to_ptr.vmem [resolvable:$true] %s52_s0  ;;  %s65_s29 = int_to_ptr.vmem [resolvable:$true] %s64_s29 }
  0x1e   :  { %s3693_s30 = scalar_lea.vmem %s53_s0, 4096  ;;  %p3698_p11 = scmp.lt.s32.totalorder %s53_s0, %s53_s0 }
  0x1f   :  { %p3694_p10 = scmp.ne.s32.totalorder %s53_s0, %s3693_s30  ;;  %p3699_p12 = scmp.lt.s32.totalorder %s3693_s30, %s3693_s30 }
  0x21   :  { %p3700_p13 = por %p3699_p12, %p3698_p11 }
  0x23   :  { %p3701_p0 = pnand %p3700_p13, %p3694_p10 }
  0x25   :  { %3704 = shalt.err (!%p3701_p0)  }
  0x26   :  { %55 = dma.hbm_to_vmem [thread:$0]  %s4356_s2, 4096, %s53_s0, [#allocation7] }
  0x27   :  { %s3713_s1 = scalar_lea.vmem %s65_s29, 4096  ;;  %p3718_p2 = scmp.lt.s32.totalorder %s65_s29, %s65_s29 }
  0x28   :  { %p3714_p1 = scmp.ne.s32.totalorder %s65_s29, %s3713_s1  ;;  %p3719_p3 = scmp.lt.s32.totalorder %s3713_s1, %s3713_s1 }
  0x2a   :  { %p3720_p4 = por %p3719_p3, %p3718_p2 }
  0x2c   :  { %p3721_p5 = pnand %p3720_p4, %p3714_p1 }
  0x2e   :  { %3724 = shalt.err (!%p3721_p5)  }
  0x2f   :  { %67 = dma.hbm_to_vmem [thread:$0]  %s4357_s3, 4096, %s65_s29, [#allocation7 + $0x1] }
  0x30   :  { %3749 = dma.done.wait [#allocation7], 4096 }
  0x31   :  { %3750 = vsyncadd [#allocation7], 4294963200 }
  0x32   :  { %3751 = dma.done.wait [#allocation7 + $0x1], 4096 }
  0x33   :  { %3752 = vsyncadd [#allocation7 + $0x1], 4294963200  ;;  %v4359_v0 = vmov 0   ;;  %v3369_v1 = vld [vmem:[#allocation3 + $0xe4] ss:$16 sps:$4 sm:$0xff]   ;;  %v3430_v44 = vld [vmem:[#allocation8 + $0x8] sm:$0xff]  }
  0x34   :  { %354 = vmatprep.mubr.bf16.mxu0 %v4359_v0  ;;  %74 = vst [vmem:[#allocation5] sm:$0xf] %v4359_v0  ;;  %427 = vmatprep.mubr.bf16.mxu1 %v4359_v0  ;;  %v3371_v2 = vld [vmem:[#allocation3 + $0xec] ss:$16 sps:$4 sm:$0xff]   ;;  %v3373_v3 = vld [vmem:[#allocation3 + $0xe0] ss:$16 sps:$4 sm:$0xff]  }
  0x35   :  { %322 = vmatprep.subr.bf16.mxu0 %v3369_v1  ;;  %v3374_v4 = vld [vmem:[#allocation3 + $0xe8] ss:$16 sps:$4 sm:$0xff]   ;;  %395 = vmatprep.subr.bf16.mxu1 %v3371_v2  ;;  %v3375_v5 = vld [vmem:[#allocation3 + $0xc4] ss:$16 sps:$4 sm:$0xff]   ;;  %v3377_v6 = vld [vmem:[#allocation3 + $0xcc] ss:$16 sps:$4 sm:$0xff]  }
  0x36   :  { %323 = vmatpush1.bf16.msra.mxu0 %v3373_v3  ;;  %396 = vmatpush1.bf16.msra.mxu1 %v3374_v4  ;;  %v3379_v7 = vld [vmem:[#allocation3 + $0xc0] ss:$16 sps:$4 sm:$0xff]   ;;  %v3380_v8 = vld [vmem:[#allocation3 + $0xc8] ss:$16 sps:$4 sm:$0xff]   ;;  %v3381_v9 = vld [vmem:[#allocation3 + $0xa4] ss:$16 sps:$4 sm:$0xff]  }
  0x37   :  { %324 = vmatprep.subr.bf16.mxu0 %v3375_v5  ;;  %397 = vmatprep.subr.bf16.mxu1 %v3377_v6  ;;  %v3383_v10 = vld [vmem:[#allocation3 + $0xac] ss:$16 sps:$4 sm:$0xff]   ;;  %v3385_v11 = vld [vmem:[#allocation3 + $0xa0] ss:$16 sps:$4 sm:$0xff]   ;;  %v3386_v12 = vld [vmem:[#allocation3 + $0xa8] ss:$16 sps:$4 sm:$0xff]  }
  0x38   :  { %v3387_v13 = vld [vmem:[#allocation3 + $0x84] ss:$16 sps:$4 sm:$0xff]   ;;  %v3389_v14 = vld [vmem:[#allocation3 + $0x8c] ss:$16 sps:$4 sm:$0xff]   ;;  %v3391_v15 = vld [vmem:[#allocation3 + $0x80] ss:$16 sps:$4 sm:$0xff]  }
  0x39   :  { %v3392_v16 = vld [vmem:[#allocation3 + $0x88] ss:$16 sps:$4 sm:$0xff]   ;;  %v3393_v17 = vld [vmem:[#allocation3 + $0x64] ss:$16 sps:$4 sm:$0xff]   ;;  %v3395_v18 = vld [vmem:[#allocation3 + $0x6c] ss:$16 sps:$4 sm:$0xff]  }
  0x3a   :  { %325 = vmatpush1.bf16.msra.mxu0 %v3379_v7  ;;  %398 = vmatpush1.bf16.msra.mxu1 %v3380_v8  ;;  %v3397_v19 = vld [vmem:[#allocation3 + $0x60] ss:$16 sps:$4 sm:$0xff]   ;;  %v3398_v20 = vld [vmem:[#allocation3 + $0x68] ss:$16 sps:$4 sm:$0xff]   ;;  %v3399_v21 = vld [vmem:[#allocation3 + $0x44] ss:$16 sps:$4 sm:$0xff]   ;;  %v118_v7 = vlaneseq }
  0x3b   :  { %326 = vmatprep.subr.bf16.mxu0 %v3381_v9  ;;  %399 = vmatprep.subr.bf16.mxu1 %v3383_v10  ;;  %v3401_v22 = vld [vmem:[#allocation3 + $0x4c] ss:$16 sps:$4 sm:$0xff]   ;;  %v3403_v23 = vld [vmem:[#allocation3 + $0x40] ss:$16 sps:$4 sm:$0xff]   ;;  %v3404_v24 = vld [vmem:[#allocation3 + $0x48] ss:$16 sps:$4 sm:$0xff]  }
  0x3c   :  { %v3405_v25 = vld [vmem:[#allocation3 + $0x24] ss:$16 sps:$4 sm:$0xff]   ;;  %v3407_v26 = vld [vmem:[#allocation3 + $0x2c] ss:$16 sps:$4 sm:$0xff]   ;;  %v3409_v27 = vld [vmem:[#allocation3 + $0x20] ss:$16 sps:$4 sm:$0xff]  }
  0x3d   :  { %v3410_v28 = vld [vmem:[#allocation3 + $0x28] ss:$16 sps:$4 sm:$0xff]   ;;  %v3411_v29 = vld [vmem:[#allocation3 + $0x4] ss:$16 sps:$4 sm:$0xff]   ;;  %v3413_v30 = vld [vmem:[#allocation3 + $0xc] ss:$16 sps:$4 sm:$0xff]  }
  0x3e   :  { %327 = vmatpush1.bf16.msra.mxu0 %v3385_v11  ;;  %400 = vmatpush1.bf16.msra.mxu1 %v3386_v12  ;;  %v3415_v31 = vld [vmem:[#allocation3] ss:$16 sps:$4 sm:$0xff]   ;;  %v3416_v32 = vld [vmem:[#allocation3 + $0x8] ss:$16 sps:$4 sm:$0xff]   ;;  %v3805_v33 = vld [vmem:[#allocation4 + $0xe4] ss:$16 sps:$4 sm:$0xff]  }
  0x3f   :  { %328 = vmatprep.subr.bf16.mxu0 %v3387_v13  ;;  %401 = vmatprep.subr.bf16.mxu1 %v3389_v14  ;;  %v3807_v34 = vld [vmem:[#allocation4 + $0xec] ss:$16 sps:$4 sm:$0xff]   ;;  %v3417_v35 = vld [vmem:[#allocation8] sm:$0xff]   ;;  %v3809_v36 = vld [vmem:[#allocation4 + $0xe0] ss:$16 sps:$4 sm:$0xff]   ;;  %v119_v8 = vshrl.u32 %v118_v7, 7 }
  0x40   :  { %v3811_v37 = vld [vmem:[#allocation4 + $0xe8] ss:$16 sps:$4 sm:$0xff]   ;;  %v3815_v38 = vld [vmem:[#allocation4 + $0xc4] ss:$16 sps:$4 sm:$0xff]   ;;  %v3817_v39 = vld [vmem:[#allocation4 + $0xcc] ss:$16 sps:$4 sm:$0xff]  }
  0x41   :  { %v3819_v40 = vld [vmem:[#allocation4 + $0xc0] ss:$16 sps:$4 sm:$0xff]   ;;  %v3823_v41 = vld [vmem:[#allocation4 + $0xc8] ss:$16 sps:$4 sm:$0xff]   ;;  %v3827_v42 = vld [vmem:[#allocation4 + $0xa4] ss:$16 sps:$4 sm:$0xff]  }
  0x42   :  { %329 = vmatpush1.bf16.msra.mxu0 %v3391_v15  ;;  %402 = vmatpush1.bf16.msra.mxu1 %v3392_v16  ;;  %v3829_v43 = vld [vmem:[#allocation4 + $0xac] ss:$16 sps:$4 sm:$0xff]   ;;  %v3833_v45 = vld [vmem:[#allocation4 + $0xa0] ss:$16 sps:$4 sm:$0xff]   ;;  %v3835_v46 = vld [vmem:[#allocation4 + $0xa8] ss:$16 sps:$4 sm:$0xff]  }
  0x43   :  { %330 = vmatprep.subr.bf16.mxu0 %v3393_v17  ;;  %403 = vmatprep.subr.bf16.mxu1 %v3395_v18  ;;  %v3839_v47 = vld [vmem:[#allocation4 + $0x84] ss:$16 sps:$4 sm:$0xff]   ;;  %v3843_v48 = vld [vmem:[#allocation4 + $0x8c] ss:$16 sps:$4 sm:$0xff]   ;;  %v3845_v49 = vld [vmem:[#allocation4 + $0x80] ss:$16 sps:$4 sm:$0xff]  }
  0x44   :  { %v3847_v50 = vld [vmem:[#allocation4 + $0x88] ss:$16 sps:$4 sm:$0xff]   ;;  %v3851_v51 = vld [vmem:[#allocation4 + $0x64] ss:$16 sps:$4 sm:$0xff]   ;;  %v3855_v52 = vld [vmem:[#allocation4 + $0x6c] ss:$16 sps:$4 sm:$0xff]  }
  0x45   :  { %v3443_v53 = vld [vmem:[#allocation8 + $0x10] sm:$0xff]   ;;  %v3859_v54 = vld [vmem:[#allocation4 + $0x60] ss:$16 sps:$4 sm:$0xff]   ;;  %v3865_v57 = vld [vmem:[#allocation4 + $0x4c] ss:$16 sps:$4 sm:$0xff]   ;;  %v128_v9 = vsub.s32 2, %v119_v8 }
  0x46   :  { %331 = vmatpush1.bf16.msra.mxu0 %v3397_v19  ;;  %404 = vmatpush1.bf16.msra.mxu1 %v3398_v20  ;;  %v3861_v55 = vld [vmem:[#allocation4 + $0x68] ss:$16 sps:$4 sm:$0xff]   ;;  %v3863_v56 = vld [vmem:[#allocation4 + $0x44] ss:$16 sps:$4 sm:$0xff]   ;;  %v3871_v58 = vld [vmem:[#allocation4 + $0x40] ss:$16 sps:$4 sm:$0xff]  }
  0x47   :  { %332 = vmatprep.subr.bf16.mxu0 %v3399_v21  ;;  %405 = vmatprep.subr.bf16.mxu1 %v3401_v22  ;;  %v3873_v59 = vld [vmem:[#allocation4 + $0x48] ss:$16 sps:$4 sm:$0xff]   ;;  %v3875_v60 = vld [vmem:[#allocation4 + $0x24] ss:$16 sps:$4 sm:$0xff]   ;;  %v3877_v61 = vld [vmem:[#allocation4 + $0x2c] ss:$16 sps:$4 sm:$0xff]  }
  0x48   :  { %v3456_v62 = vld [vmem:[#allocation8 + $0x18] sm:$0xff]   ;;  %v3887_v1 = vld [vmem:[#allocation4 + $0x28] ss:$16 sps:$4 sm:$0xff]   ;;  %v3889_v2 = vld [vmem:[#allocation4 + $0x4] ss:$16 sps:$4 sm:$0xff]   ;;  %v120_v10 = vsub.s32 0, %v119_v8 }
  0x49   :  { %v3885_v63 = vld [vmem:[#allocation4 + $0x20] ss:$16 sps:$4 sm:$0xff]   ;;  %v3891_v3 = vld [vmem:[#allocation4 + $0xc] ss:$16 sps:$4 sm:$0xff]   ;;  %v3901_v5 = vld [vmem:[#allocation4 + $0x8] ss:$16 sps:$4 sm:$0xff]  }
  0x4a   :  { %333 = vmatpush1.bf16.msra.mxu0 %v3403_v23  ;;  %406 = vmatpush1.bf16.msra.mxu1 %v3404_v24  ;;  %v3899_v4 = vld [vmem:[#allocation4] ss:$16 sps:$4 sm:$0xff]   ;;  %v132_v11 = vsub.s32 3, %v119_v8  ;;  %v116_v12 = vld [vmem:[#allocation11] sm:$0xf]  ;;  %v124_v16 = vsub.s32 1, %v119_v8 }
  0x4b   :  { %334 = vmatprep.subr.bf16.mxu0 %v3405_v25  ;;  %407 = vmatprep.subr.bf16.mxu1 %v3407_v26  ;;  %v500_v6 = vld [vmem:[#allocation5] sm:$0xf]  ;;  %v3949_v15 = vrot.slane %v116_v12, %v128_v9  ;;  %v121_v19 = vrot.slane %v116_v12, %v120_v10  ;;  %s3762_s2 = smov [#allocation13]  }
  0x4c   :  { %v3955_v20 = vrot.slane %v116_v12, %v132_v11  ;;  %v125_v23 = vrot.slane %v116_v12, %v124_v16  ;;  %s3015_s3 = sshll.u32 %s3762_s2, 4  ;;  %s3016_s3 = int_to_ptr.vmem [resolvable:$true] %s3015_s3 }
  0x4d   :  { %s3725_s9 = scalar_lea.vmem %s3016_s3, 1024  ;;  %p3730_p7 = scmp.lt.s32.totalorder %s3016_s3, %s3016_s3 }
  0x4e   :  { %335 = vmatpush1.bf16.msra.mxu0 %v3409_v27  ;;  %408 = vmatpush1.bf16.msra.mxu1 %v3410_v28  ;;  %p3726_p6 = scmp.ne.s32.totalorder %s3016_s3, %s3725_s9  ;;  %p3731_p8 = scmp.lt.s32.totalorder %s3725_s9, %s3725_s9 }
  0x4f   :  { %336 = vmatprep.subr.bf16.mxu0 %v3411_v29  ;;  %409 = vmatprep.subr.bf16.mxu1 %v3413_v30 }
  0x50   :  { %p3732_p9 = por %p3731_p8, %p3730_p7 }
  0x52   :  { %337 = vmatpush1.bf16.msra.mxu0 %v3415_v31  ;;  %410 = vmatpush1.bf16.msra.mxu1 %v3416_v32  ;;  %p3733_p10 = pnand %p3732_p9, %p3726_p6 }
  0x53   :  { %698 = vmatprep.subr.bf16.mxu0 %v3805_v33  ;;  %739 = vmatprep.subr.bf16.mxu1 %v3807_v34 }
  0x55   :  { %355 = vmatmul.mubr.bf16.vlgmr.msra.gmra.mxu0 %v3417_v35  ;;  %428 = vmatmul.mubr.bf16.vlgmr.msra.gmra.mxu1 %v3417_v35 }
  0x56   :  { %699 = vmatpush1.bf16.msra.mxu0 %v3809_v36  ;;  %740 = vmatpush1.bf16.msra.mxu1 %v3811_v37 }
  0x57   :  { %700 = vmatprep.subr.bf16.mxu0 %v3815_v38  ;;  %741 = vmatprep.subr.bf16.mxu1 %v3817_v39 }
  0x58   :  { %364 = vmatprep.mubr.bf16.mxu0 %v4359_v0  ;;  %437 = vmatprep.mubr.bf16.mxu1 %v4359_v0 }
  0x5a   :  { %701 = vmatpush1.bf16.msra.mxu0 %v3819_v40  ;;  %742 = vmatpush1.bf16.msra.mxu1 %v3823_v41 }
  0x5b   :  { %702 = vmatprep.subr.bf16.mxu0 %v3827_v42  ;;  %743 = vmatprep.subr.bf16.mxu1 %v3829_v43 }
  0x5d   :  { %365 = vmatmul.mubr.bf16.gmra.mxu0 %v3430_v44  ;;  %438 = vmatmul.mubr.bf16.gmra.mxu1 %v3430_v44 }
  0x5e   :  { %703 = vmatpush1.bf16.msra.mxu0 %v3833_v45  ;;  %744 = vmatpush1.bf16.msra.mxu1 %v3835_v46 }
  0x5f   :  { %704 = vmatprep.subr.bf16.mxu0 %v3839_v47  ;;  %745 = vmatprep.subr.bf16.mxu1 %v3843_v48 }
  0x60   :  { %374 = vmatprep.mubr.bf16.mxu0 %v4359_v0  ;;  %447 = vmatprep.mubr.bf16.mxu1 %v4359_v0 }
  0x62   :  { %705 = vmatpush1.bf16.msra.mxu0 %v3845_v49  ;;  %746 = vmatpush1.bf16.msra.mxu1 %v3847_v50 }
  0x63   :  { %706 = vmatprep.subr.bf16.mxu0 %v3851_v51  ;;  %747 = vmatprep.subr.bf16.mxu1 %v3855_v52 }
  0x65   :  { %375 = vmatmul.mubr.bf16.gmra.mxu0 %v3443_v53  ;;  %448 = vmatmul.mubr.bf16.gmra.mxu1 %v3443_v53 }
  0x66   :  { %707 = vmatpush1.bf16.msra.mxu0 %v3859_v54  ;;  %748 = vmatpush1.bf16.msra.mxu1 %v3861_v55 }
  0x67   :  { %708 = vmatprep.subr.bf16.mxu0 %v3863_v56  ;;  %749 = vmatprep.subr.bf16.mxu1 %v3865_v57 }
  0x68   :  { %384 = vmatprep.mubr.bf16.mxu0 %v4359_v0  ;;  %457 = vmatprep.mubr.bf16.mxu1 %v4359_v0 }
  0x6a   :  { %709 = vmatpush1.bf16.msra.mxu0 %v3871_v58  ;;  %750 = vmatpush1.bf16.msra.mxu1 %v3873_v59 }
  0x6b   :  { %710 = vmatprep.subr.bf16.mxu0 %v3875_v60  ;;  %751 = vmatprep.subr.bf16.mxu1 %v3877_v61 }
  0x6d   :  { %385 = vmatmul.mubr.bf16.gmra.mxu0 %v3456_v62  ;;  %458 = vmatmul.mubr.bf16.gmra.mxu1 %v3456_v62 }
  0x6e   :  { %711 = vmatpush1.bf16.msra.mxu0 %v3885_v63  ;;  %752 = vmatpush1.bf16.msra.mxu1 %v3887_v1 }
  0x6f   :  { %712 = vmatprep.subr.bf16.mxu0 %v3889_v2  ;;  %753 = vmatprep.subr.bf16.mxu1 %v3891_v3 }
  0x70   :  { %730 = vmatprep.mubr.bf16.mxu0 %v4359_v0  ;;  %771 = vmatprep.mubr.bf16.mxu1 %v4359_v0 }
  0x72   :  { %713 = vmatpush1.bf16.msra.mxu0 %v3899_v4  ;;  %754 = vmatpush1.bf16.msra.mxu1 %v3901_v5 }
  0x73   :  { %1011 = vmatprep.subr.bf16.mxu0 %v3805_v33  ;;  %1052 = vmatprep.subr.bf16.mxu1 %v3807_v34 }
  0x75   :  { %731 = vmatmul.mubr.bf16.vlgmr.msra.gmra.mxu0 %v500_v6  ;;  %772 = vmatmul.mubr.bf16.vlgmr.msra.gmra.mxu1 %v500_v6 }
  0x76   :  { %1012 = vmatpush1.bf16.msra.mxu0 %v3809_v36  ;;  %1053 = vmatpush1.bf16.msra.mxu1 %v3811_v37 }
  0x77   :  { %1013 = vmatprep.subr.bf16.mxu0 %v3815_v38  ;;  %1054 = vmatprep.subr.bf16.mxu1 %v3817_v39 }
  0x78   :  { %1043 = vmatprep.mubr.bf16.mxu0 %v4359_v0  ;;  %1084 = vmatprep.mubr.bf16.mxu1 %v4359_v0 }
  0x7a   :  { %1014 = vmatpush1.bf16.msra.mxu0 %v3819_v40  ;;  %1055 = vmatpush1.bf16.msra.mxu1 %v3823_v41 }
  0x7b   :  { %1015 = vmatprep.subr.bf16.mxu0 %v3827_v42  ;;  %1056 = vmatprep.subr.bf16.mxu1 %v3829_v43 }
  0x7e   :  { %1016 = vmatpush1.bf16.msra.mxu0 %v3833_v45  ;;  %1057 = vmatpush1.bf16.msra.mxu1 %v3835_v46 }
  0x7f   :  { %1017 = vmatprep.subr.bf16.mxu0 %v3839_v47  ;;  %1058 = vmatprep.subr.bf16.mxu1 %v3843_v48 }
  0x82   :  { %1018 = vmatpush1.bf16.msra.mxu0 %v3845_v49  ;;  %1059 = vmatpush1.bf16.msra.mxu1 %v3847_v50 }
  0x83   :  { %1019 = vmatprep.subr.bf16.mxu0 %v3851_v51  ;;  %1060 = vmatprep.subr.bf16.mxu1 %v3855_v52 }
  0x86   :  { %1020 = vmatpush1.bf16.msra.mxu0 %v3859_v54  ;;  %1061 = vmatpush1.bf16.msra.mxu1 %v3861_v55 }
  0x87   :  { %1021 = vmatprep.subr.bf16.mxu0 %v3863_v56  ;;  %1062 = vmatprep.subr.bf16.mxu1 %v3865_v57 }
  0x8a   :  { %1022 = vmatpush1.bf16.msra.mxu0 %v3871_v58  ;;  %1063 = vmatpush1.bf16.msra.mxu1 %v3873_v59 }
  0x8b   :  { %1023 = vmatprep.subr.bf16.mxu0 %v3875_v60  ;;  %1064 = vmatprep.subr.bf16.mxu1 %v3877_v61 }
  0x8e   :  { %1024 = vmatpush1.bf16.msra.mxu0 %v3885_v63  ;;  %1065 = vmatpush1.bf16.msra.mxu1 %v3887_v1 }
  0x8f   :  { %1025 = vmatprep.subr.bf16.mxu0 %v3889_v2  ;;  %1066 = vmatprep.subr.bf16.mxu1 %v3891_v3 }
  0x92   :  { %1026 = vmatpush1.bf16.msra.mxu0 %v3899_v4  ;;  %1067 = vmatpush1.bf16.msra.mxu1 %v3901_v5 }
  0x93   :  { %1325 = vmatprep.subr.bf16.mxu0 %v3805_v33  ;;  %1366 = vmatprep.subr.bf16.mxu1 %v3807_v34 }
 0x115   :  { %v3945_v13 = vpop.f32.mrf.mxu0  ;;  %v3947_v14 = vpop.f32.mrf.mxu1 }
 0x117   :  { %v3951_v17 = vpop.f32.mrf.mxu0  ;;  %v3953_v18 = vpop.f32.mrf.mxu1 }
 0x119   :  { %v360_v21 = vpop.f32.mrf.mxu0  ;;  %v433_v22 = vpop.f32.mrf.mxu1 }
 0x11a   :  { %v3957_v24 = vadd.f32 %v360_v21, %v121_v19  ;;  %v3960_v25 = vadd.f32 %v433_v22, %v3949_v15 }
 0x11b   :  { %v362_v26 = vpop.f32.mrf.mxu0  ;;  %v435_v27 = vpop.f32.mrf.mxu1 }
 0x11c   :  { %v3962_v28 = vadd.f32 %v362_v26, %v125_v23  ;;  %v3965_v29 = vadd.f32 %v435_v27, %v3955_v20 }
 0x11d   :  { %v366_v30 = vpop.f32.mrf.mxu0  ;;  %v439_v31 = vpop.f32.mrf.mxu1 }
 0x11e   :  { %v3967_v32 = vadd.f32 %v366_v30, %v121_v19  ;;  %v3970_v35 = vadd.f32 %v439_v31, %v3949_v15 }
 0x11f   :  { %v368_v44 = vpop.f32.mrf.mxu0  ;;  %v441_v53 = vpop.f32.mrf.mxu1 }
 0x120   :  { %4361 = vst [vmem:[#allocation25_spill] sm:$0xff] %v3970_v35  ;;  %v3972_v62 = vadd.f32 %v368_v44, %v125_v23  ;;  %v3975_v6 = vadd.f32 %v441_v53, %v3955_v20 }
 0x121   :  { %v370_v7 = vpop.f32.mrf.mxu0  ;;  %v443_v8 = vpop.f32.mrf.mxu1 }
 0x122   :  { %v3977_v9 = vadd.f32 %v370_v7, %v121_v19  ;;  %v3980_v10 = vadd.f32 %v443_v8, %v3949_v15 }
 0x123   :  { %v372_v11 = vpop.f32.mrf.mxu0  ;;  %v445_v12 = vpop.f32.mrf.mxu1 }
 0x124   :  { %4362 = vst [vmem:[#allocation26_spill] sm:$0xff] %v3977_v9  ;;  %4363 = vst [vmem:[#allocation27_spill] sm:$0xff] %v3980_v10  ;;  %v3982_v16 = vadd.f32 %v372_v11, %v125_v23  ;;  %v3985_v21 = vadd.f32 %v445_v12, %v3955_v20 }
 0x125   :  { %v376_v22 = vpop.f32.mrf.mxu0  ;;  %v449_v26 = vpop.f32.mrf.mxu1 }
 0x126   :  { %4364 = vst [vmem:[#allocation28_spill] sm:$0xff] %v3982_v16  ;;  %4365 = vst [vmem:[#allocation29_spill] sm:$0xff] %v3985_v21  ;;  %v3987_v27 = vadd.f32 %v376_v22, %v121_v19  ;;  %v3990_v30 = vadd.f32 %v449_v26, %v3949_v15 }
 0x127   :  { %v378_v31 = vpop.f32.mrf.mxu0  ;;  %v451_v44 = vpop.f32.mrf.mxu1 }
 0x128   :  { %4366 = vst [vmem:[#allocation30_spill] sm:$0xff] %v3987_v27  ;;  %4367 = vst [vmem:[#allocation31_spill] sm:$0xff] %v3990_v30  ;;  %v3992_v53 = vadd.f32 %v378_v31, %v125_v23  ;;  %v3995_v7 = vadd.f32 %v451_v44, %v3955_v20 }
 0x129   :  { %v380_v8 = vpop.f32.mrf.mxu0  ;;  %v453_v11 = vpop.f32.mrf.mxu1 }
 0x12a   :  { %4368 = vst [vmem:[#allocation32_spill] sm:$0xff] %v3992_v53  ;;  %4369 = vst [vmem:[#allocation33_spill] sm:$0xff] %v3995_v7  ;;  %v3997_v0 = vadd.f32 %v380_v8, %v121_v19  ;;  %v4000_v12 = vadd.f32 %v453_v11, %v3949_v15 }
 0x12b   :  { %v382_v10 = vpop.f32.mrf.mxu0  ;;  %v455_v22 = vpop.f32.mrf.mxu1 }
 0x12c   :  { %4370 = vst [vmem:[#allocation34_spill] sm:$0xff] %v3997_v0  ;;  %4371 = vst [vmem:[#allocation35_spill] sm:$0xff] %v4000_v12  ;;  %v4002_v27 = vadd.f32 %v382_v10, %v125_v23  ;;  %v4005_v26 = vadd.f32 %v455_v22, %v3955_v20 }
 0x12d   :  { %v386_v30 = vpop.f32.mrf.mxu0  ;;  %v459_v31 = vpop.f32.mrf.mxu1 }
 0x12e   :  { %4372 = vst [vmem:[#allocation36_spill] sm:$0xff] %v4002_v27  ;;  %4373 = vst [vmem:[#allocation37_spill] sm:$0xff] %v4005_v26  ;;  %v4007_v53 = vadd.f32 %v386_v30, %v121_v19  ;;  %v4010_v44 = vadd.f32 %v459_v31, %v3949_v15 }
 0x12f   :  { %v388_v7 = vpop.f32.mrf.mxu0  ;;  %v461_v8 = vpop.f32.mrf.mxu1 }
 0x130   :  { %4374 = vst [vmem:[#allocation38_spill] sm:$0xff] %v4007_v53  ;;  %4375 = vst [vmem:[#allocation39_spill] sm:$0xff] %v4010_v44  ;;  %v4012_v0 = vadd.f32 %v388_v7, %v125_v23  ;;  %v4015_v11 = vadd.f32 %v461_v8, %v3955_v20  ;;  %v357_v53 = vadd.f32 %v3945_v13, %v121_v19 }
 0x131   :  { %v390_v12 = vpop.f32.mrf.mxu0  ;;  %v463_v10 = vpop.f32.mrf.mxu1  ;;  %v359_v8 = vadd.f32 %v3951_v17, %v125_v23 }
 0x132   :  { %4376 = vst [vmem:[#allocation40_spill] sm:$0xff] %v4012_v0  ;;  %4377 = vst [vmem:[#allocation41_spill] sm:$0xff] %v4015_v11  ;;  %v4017_v27 = vadd.f32 %v390_v12, %v121_v19  ;;  %v4020_v22 = vadd.f32 %v463_v10, %v3949_v15  ;;  %v432_v19 = vadd.f32 %v3953_v18, %v3955_v20 }
 0x133   :  { %v392_v26 = vpop.f32.mrf.mxu0  ;;  %v465_v30 = vpop.f32.mrf.mxu1 }
 0x134   :  { %4378 = vst [vmem:[#allocation42_spill] sm:$0xff] %v4017_v27  ;;  %4379 = vst [vmem:[#allocation43_spill] sm:$0xff] %v4020_v22  ;;  %v4023_v31 = vadd.f32 %v392_v26, %v125_v23  ;;  %v4026_v44 = vadd.f32 %v465_v30, %v3955_v20  ;;  %v430_v30 = vadd.f32 %v3947_v14, %v3949_v15 }
 0x135   :  { %v732_v7 = vpop.f32.mrf.mxu0  ;;  %v773_v0 = vpop.f32.mrf.mxu1 }
 0x136   :  { %v780_v11 = vadd.f32 %v732_v7, %v357_v53  ;;  %v782_v53 = vadd.f32 %v773_v0, %v430_v30 }
 0x137   :  { %v734_v21 = vpop.f32.mrf.mxu0  ;;  %v775_v12 = vpop.f32.mrf.mxu1 }
 0x138   :  { %v3109_v27 = vmul.f32 -1.442695, %v780_v11  ;;  %v781_v16 = vadd.f32 %v734_v21, %v359_v8  ;;  %v783_v26 = vadd.f32 %v775_v12, %v432_v19 }
 0x139   :  { %v736_v10 = vpop.f32.mrf.mxu0  ;;  %v777_v22 = vpop.f32.mrf.mxu1 }
 0x13a   :  { %3517 = vpow2.f32 %v3109_v27  ;;  %v3110_v9 = vmul.f32 -1.442695, %v781_v16  ;;  %v3111_v17 = vmul.f32 -1.442695, %v783_v26 }
 0x13b   :  { %v737_v35 = vpop.f32.mrf.mxu0  ;;  %v778_v13 = vpop.f32.mrf.mxu1 }
 0x13c   :  { %3519 = vpow2.f32 %v3110_v9  ;;  %v4380_v13 = vmov 0  }
 0x13d   :  { %3521 = vpow2.f32 %v3111_v17 }
 0x147   :  { %v3518_v23 = vpop.eup %3517 }
 0x148   :  { %v787_v7 = vadd.f32 1.0, %v3518_v23 }
 0x149   :  { %v3520_v11 = vpop.eup %3519 }
 0x14a   :  { %3523 = vrcp.f32 %v787_v7  ;;  %v793_v21 = vadd.f32 1.0, %v3520_v11  ;;  %v3522_v35 = vpop.eup %3521 }
 0x14b   :  { %3525 = vtanh.f32 %v782_v53  ;;  %v800_v22 = vadd.f32 1.0, %v3522_v35 }
 0x14c   :  { %3527 = vrcp.f32 %v793_v21 }
 0x14d   :  { %3529 = vrcp.f32 %v800_v22 }
 0x157   :  { %v3524_v16 = vpop.eup %3523 }
 0x158   :  { %v3526_v9 = vpop.eup %3525 }
 0x159   :  { %v3528_v27 = vpop.eup %3527  ;;  %v804_v20 = vmul.f32 %v3526_v9, %v3524_v16 }
 0x15a   :  { %v803_v18 = vmul.f32 0.0, %v3528_v27  ;;  %v3530_v0 = vpop.eup %3529 }
 0x15c   :  { %v4033_v8 = vadd.f32 %v804_v20, %v803_v18 }
 0x15e   :  { %3531 = vtanh.f32 %v4033_v8 }
 0x16b   :  { %v3532_v14 = vpop.eup %3531 }
 0x16c   :  { %v807_v15 = vmul.f32 %v3532_v14, %v3530_v0 }
 0x16e   :  { %v809_v12 = vpack.c.bf16 %v807_v15, %v807_v15  ;;  %811 = vst [vmem:[#allocation13] sm:$0xff] %v807_v15 }
 0x170   :  { %810 = vst [vmem:[#allocation5] sm:$0xf] %v809_v12 }
 0x177   :  { %v812_v10 = vld [vmem:[#allocation5] sm:$0xf] }
 0x178   :  { %1044 = vmatmul.mubr.bf16.vlgmr.msra.gmra.mxu0 %v812_v10  ;;  %1085 = vmatmul.mubr.bf16.vlgmr.msra.gmra.mxu1 %v812_v10 }
 0x179   :  { %1326 = vmatpush1.bf16.msra.mxu0 %v3809_v36  ;;  %1367 = vmatpush1.bf16.msra.mxu1 %v3811_v37 }
 0x17a   :  { %1327 = vmatprep.subr.bf16.mxu0 %v3815_v38  ;;  %1368 = vmatprep.subr.bf16.mxu1 %v3817_v39 }
 0x17b   :  { %1357 = vmatprep.mubr.bf16.mxu0 %v4380_v13  ;;  %1398 = vmatprep.mubr.bf16.mxu1 %v4380_v13 }
 0x17d   :  { %1328 = vmatpush1.bf16.msra.mxu0 %v3819_v40  ;;  %1369 = vmatpush1.bf16.msra.mxu1 %v3823_v41 }
 0x17e   :  { %1329 = vmatprep.subr.bf16.mxu0 %v3827_v42  ;;  %1370 = vmatprep.subr.bf16.mxu1 %v3829_v43 }
 0x181   :  { %1330 = vmatpush1.bf16.msra.mxu0 %v3833_v45  ;;  %1371 = vmatpush1.bf16.msra.mxu1 %v3835_v46 }
 0x182   :  { %1331 = vmatprep.subr.bf16.mxu0 %v3839_v47  ;;  %1372 = vmatprep.subr.bf16.mxu1 %v3843_v48 }
 0x185   :  { %1332 = vmatpush1.bf16.msra.mxu0 %v3845_v49  ;;  %1373 = vmatpush1.bf16.msra.mxu1 %v3847_v50 }
 0x186   :  { %1333 = vmatprep.subr.bf16.mxu0 %v3851_v51  ;;  %1374 = vmatprep.subr.bf16.mxu1 %v3855_v52 }
 0x189   :  { %1334 = vmatpush1.bf16.msra.mxu0 %v3859_v54  ;;  %1375 = vmatpush1.bf16.msra.mxu1 %v3861_v55 }
 0x18a   :  { %1335 = vmatprep.subr.bf16.mxu0 %v3863_v56  ;;  %1376 = vmatprep.subr.bf16.mxu1 %v3865_v57 }
 0x18d   :  { %1336 = vmatpush1.bf16.msra.mxu0 %v3871_v58  ;;  %1377 = vmatpush1.bf16.msra.mxu1 %v3873_v59 }
 0x18e   :  { %1337 = vmatprep.subr.bf16.mxu0 %v3875_v60  ;;  %1378 = vmatprep.subr.bf16.mxu1 %v3877_v61 }
 0x191   :  { %1338 = vmatpush1.bf16.msra.mxu0 %v3885_v63  ;;  %1379 = vmatpush1.bf16.msra.mxu1 %v3887_v1 }
 0x192   :  { %1339 = vmatprep.subr.bf16.mxu0 %v3889_v2  ;;  %1380 = vmatprep.subr.bf16.mxu1 %v3891_v3 }
 0x195   :  { %1340 = vmatpush1.bf16.msra.mxu0 %v3899_v4  ;;  %1381 = vmatpush1.bf16.msra.mxu1 %v3901_v5 }
 0x196   :  { %1639 = vmatprep.subr.bf16.mxu0 %v3805_v33  ;;  %1680 = vmatprep.subr.bf16.mxu1 %v3807_v34 }
 0x238   :  { %v1045_v19 = vpop.f32.mrf.mxu0  ;;  %v1086_v26 = vpop.f32.mrf.mxu1 }
 0x239   :  { %v1093_v30 = vadd.f32 %v1045_v19, %v3957_v24  ;;  %v1095_v34 = vadd.f32 %v1086_v26, %v3960_v25 }
 0x23a   :  { %v1047_v17 = vpop.f32.mrf.mxu0  ;;  %v1088_v23 = vpop.f32.mrf.mxu1 }
 0x23b   :  { %v3144_v53 = vmul.f32 -1.442695, %v1093_v30  ;;  %v1094_v7 = vadd.f32 %v1047_v17, %v3962_v28  ;;  %v1096_v33 = vadd.f32 %v1088_v23, %v3965_v29 }
 0x23c   :  { %v1049_v11 = vpop.f32.mrf.mxu0  ;;  %v1090_v21 = vpop.f32.mrf.mxu1 }
 0x23d   :  { %3533 = vpow2.f32 %v3144_v53  ;;  %v3145_v35 = vmul.f32 -1.442695, %v1094_v7  ;;  %v3146_v27 = vmul.f32 -1.442695, %v1096_v33  ;;  %v4122_v53 = vld [vmem:[#allocation4 + $0xec] ss:$16 sps:$4 sm:$0xff]  }
 0x23e   :  { %v1050_v16 = vpop.f32.mrf.mxu0  ;;  %v1091_v9 = vpop.f32.mrf.mxu1  ;;  %v4124_v7 = vld [vmem:[#allocation4 + $0xe0] ss:$16 sps:$4 sm:$0xff]   ;;  %v4126_v11 = vld [vmem:[#allocation4 + $0xe8] ss:$16 sps:$4 sm:$0xff]   ;;  %v4132_v21 = vld [vmem:[#allocation4 + $0xc4] ss:$16 sps:$4 sm:$0xff]  }
 0x23f   :  { %3535 = vpow2.f32 %v3145_v35  ;;  %v4134_v35 = vld [vmem:[#allocation4 + $0xcc] ss:$16 sps:$4 sm:$0xff]   ;;  %v4136_v16 = vld [vmem:[#allocation4 + $0xc0] ss:$16 sps:$4 sm:$0xff]   ;;  %v4138_v9 = vld [vmem:[#allocation4 + $0xc8] ss:$16 sps:$4 sm:$0xff]  }
 0x240   :  { %3537 = vtanh.f32 %v1095_v34  ;;  %v4144_v33 = vld [vmem:[#allocation4 + $0xa4] ss:$16 sps:$4 sm:$0xff]   ;;  %v4146_v34 = vld [vmem:[#allocation4 + $0xac] ss:$16 sps:$4 sm:$0xff]  }
 0x241   :  { %3539 = vpow2.f32 %v3146_v27  ;;  %v4148_v27 = vld [vmem:[#allocation4 + $0xa0] ss:$16 sps:$4 sm:$0xff]  }
 0x24a   :  { %v3534_v22 = vpop.eup %3533 }
 0x24b   :  { %v1100_v18 = vadd.f32 1.0, %v3534_v22  ;;  %v4150_v22 = vld [vmem:[#allocation4 + $0xa8] ss:$16 sps:$4 sm:$0xff]  }
 0x24c   :  { %v3536_v24 = vpop.eup %3535 }
 0x24d   :  { %3541 = vrcp.f32 %v1100_v18  ;;  %v1106_v20 = vadd.f32 1.0, %v3536_v24  ;;  %v3538_v28 = vpop.eup %3537  ;;  %v4156_v18 = vld [vmem:[#allocation4 + $0x84] ss:$16 sps:$4 sm:$0xff]   ;;  %v4158_v24 = vld [vmem:[#allocation4 + $0x8c] ss:$16 sps:$4 sm:$0xff]  }
 0x24e   :  { %v3540_v0 = vpop.eup %3539 }
 0x24f   :  { %3543 = vrcp.f32 %v1106_v20  ;;  %v1113_v10 = vadd.f32 1.0, %v3540_v0  ;;  %v4160_v20 = vld [vmem:[#allocation4 + $0x80] ss:$16 sps:$4 sm:$0xff]   ;;  %v4168_v0 = vld [vmem:[#allocation4 + $0x64] ss:$16 sps:$4 sm:$0xff]  }
 0x251   :  { %3545 = vrcp.f32 %v1113_v10  ;;  %v4180_v10 = vld [vmem:[#allocation4 + $0x44] ss:$16 sps:$4 sm:$0xff]  }
 0x25a   :  { %v3542_v14 = vpop.eup %3541 }
 0x25b   :  { %v1117_v15 = vmul.f32 %v3542_v14, %v3538_v28  ;;  %v4162_v28 = vld [vmem:[#allocation4 + $0x88] ss:$16 sps:$4 sm:$0xff]   ;;  %v4170_v14 = vld [vmem:[#allocation4 + $0x6c] ss:$16 sps:$4 sm:$0xff]  }
 0x25c   :  { %v3544_v12 = vpop.eup %3543 }
 0x25d   :  { %v1116_v19 = vmul.f32 %v3544_v12, %v4033_v8  ;;  %v4120_v8 = vld [vmem:[#allocation4 + $0xe4] ss:$16 sps:$4 sm:$0xff]   ;;  %v4174_v12 = vld [vmem:[#allocation4 + $0x68] ss:$16 sps:$4 sm:$0xff]  }
 0x25e   :  { %v3546_v25 = vpop.eup %3545 }
 0x25f   :  { %v4075_v29 = vadd.f32 %v1117_v15, %v1116_v19  ;;  %v4172_v15 = vld [vmem:[#allocation4 + $0x60] ss:$16 sps:$4 sm:$0xff]   ;;  %v4182_v19 = vld [vmem:[#allocation4 + $0x4c] ss:$16 sps:$4 sm:$0xff]  }
 0x261   :  { %3547 = vtanh.f32 %v4075_v29 }
 0x26e   :  { %v3548_v26 = vpop.eup %3547 }
 0x26f   :  { %v1120_v30 = vmul.f32 %v3548_v26, %v3546_v25  ;;  %v4186_v25 = vld [vmem:[#allocation4 + $0x48] ss:$16 sps:$4 sm:$0xff]   ;;  %v4192_v26 = vld [vmem:[#allocation4 + $0x24] ss:$16 sps:$4 sm:$0xff]  }
 0x271   :  { %v1122_v17 = vpack.c.bf16 %v1120_v30, %v1120_v30  ;;  %1125 = vst [vmem:[#allocation13 + $0x8] sm:$0xff] %v1120_v30  ;;  %v4194_v30 = vld [vmem:[#allocation4 + $0x2c] ss:$16 sps:$4 sm:$0xff]  }
 0x273   :  { %1123 = vst [vmem:[#allocation5] sm:$0xf] %v1122_v17  ;;  %v4196_v17 = vld [vmem:[#allocation4 + $0x20] ss:$16 sps:$4 sm:$0xff]  }
 0x27a   :  { %v1126_v23 = vld [vmem:[#allocation5] sm:$0xf] }
 0x27b   :  { %1358 = vmatmul.mubr.bf16.vlgmr.msra.gmra.mxu0 %v1126_v23  ;;  %1399 = vmatmul.mubr.bf16.vlgmr.msra.gmra.mxu1 %v1126_v23  ;;  %v4198_v23 = vld [vmem:[#allocation4 + $0x28] ss:$16 sps:$4 sm:$0xff]  }
 0x27c   :  { %1640 = vmatpush1.bf16.msra.mxu0 %v3809_v36  ;;  %1681 = vmatpush1.bf16.msra.mxu1 %v3811_v37 }
 0x27d   :  { %1641 = vmatprep.subr.bf16.mxu0 %v3815_v38  ;;  %1682 = vmatprep.subr.bf16.mxu1 %v3817_v39 }
 0x27e   :  { %1671 = vmatprep.mubr.bf16.mxu0 %v4380_v13  ;;  %1712 = vmatprep.mubr.bf16.mxu1 %v4380_v13 }
 0x280   :  { %1642 = vmatpush1.bf16.msra.mxu0 %v3819_v40  ;;  %1683 = vmatpush1.bf16.msra.mxu1 %v3823_v41 }
 0x281   :  { %1643 = vmatprep.subr.bf16.mxu0 %v3827_v42  ;;  %1684 = vmatprep.subr.bf16.mxu1 %v3829_v43 }
 0x284   :  { %1644 = vmatpush1.bf16.msra.mxu0 %v3833_v45  ;;  %1685 = vmatpush1.bf16.msra.mxu1 %v3835_v46 }
 0x285   :  { %1645 = vmatprep.subr.bf16.mxu0 %v3839_v47  ;;  %1686 = vmatprep.subr.bf16.mxu1 %v3843_v48 }
 0x288   :  { %1646 = vmatpush1.bf16.msra.mxu0 %v3845_v49  ;;  %1687 = vmatpush1.bf16.msra.mxu1 %v3847_v50  ;;  %v4381_v50 = vld [vmem:[#allocation25_spill] sm:$0xff] }
 0x289   :  { %1647 = vmatprep.subr.bf16.mxu0 %v3851_v51  ;;  %1688 = vmatprep.subr.bf16.mxu1 %v3855_v52 }
 0x28c   :  { %1648 = vmatpush1.bf16.msra.mxu0 %v3859_v54  ;;  %1689 = vmatpush1.bf16.msra.mxu1 %v3861_v55 }
 0x28d   :  { %1649 = vmatprep.subr.bf16.mxu0 %v3863_v56  ;;  %1690 = vmatprep.subr.bf16.mxu1 %v3865_v57 }
 0x290   :  { %1650 = vmatpush1.bf16.msra.mxu0 %v3871_v58  ;;  %1691 = vmatpush1.bf16.msra.mxu1 %v3873_v59 }
 0x291   :  { %1651 = vmatprep.subr.bf16.mxu0 %v3875_v60  ;;  %1692 = vmatprep.subr.bf16.mxu1 %v3877_v61 }
 0x294   :  { %1652 = vmatpush1.bf16.msra.mxu0 %v3885_v63  ;;  %1693 = vmatpush1.bf16.msra.mxu1 %v3887_v1 }
 0x295   :  { %1653 = vmatprep.subr.bf16.mxu0 %v3889_v2  ;;  %1694 = vmatprep.subr.bf16.mxu1 %v3891_v3 }
 0x298   :  { %1654 = vmatpush1.bf16.msra.mxu0 %v3899_v4  ;;  %1695 = vmatpush1.bf16.msra.mxu1 %v3901_v5 }
 0x299   :  { %1953 = vmatprep.subr.bf16.mxu0 %v4120_v8  ;;  %1994 = vmatprep.subr.bf16.mxu1 %v4122_v53 }
 0x33b   :  { %v1359_v36 = vpop.f32.mrf.mxu0  ;;  %v1400_v37 = vpop.f32.mrf.mxu1 }
 0x33c   :  { %v1407_v38 = vadd.f32 %v1359_v36, %v3967_v32  ;;  %v1409_v51 = vadd.f32 %v1400_v37, %v4381_v50  ;;  %v4202_v36 = vld [vmem:[#allocation4 + $0x4] ss:$16 sps:$4 sm:$0xff]   ;;  %v4204_v37 = vld [vmem:[#allocation4 + $0xc] ss:$16 sps:$4 sm:$0xff]  }
 0x33d   :  { %v1361_v39 = vpop.f32.mrf.mxu0  ;;  %v1402_v40 = vpop.f32.mrf.mxu1 }
 0x33e   :  { %v3179_v41 = vmul.f32 -1.442695, %v1407_v38  ;;  %v1408_v42 = vadd.f32 %v1361_v39, %v3972_v62  ;;  %v1410_v49 = vadd.f32 %v1402_v40, %v3975_v6  ;;  %v4208_v38 = vld [vmem:[#allocation4] ss:$16 sps:$4 sm:$0xff]   ;;  %v4210_v39 = vld [vmem:[#allocation4 + $0x8] ss:$16 sps:$4 sm:$0xff]  }
 0x33f   :  { %v1363_v43 = vpop.f32.mrf.mxu0  ;;  %v1404_v45 = vpop.f32.mrf.mxu1 }
 0x340   :  { %3549 = vpow2.f32 %v3179_v41  ;;  %v3180_v46 = vmul.f32 -1.442695, %v1408_v42  ;;  %v3181_v52 = vmul.f32 -1.442695, %v1410_v49  ;;  %v4382_v42 = vld [vmem:[#allocation26_spill] sm:$0xff] }
 0x341   :  { %v1364_v47 = vpop.f32.mrf.mxu0  ;;  %v1405_v48 = vpop.f32.mrf.mxu1 }
 0x342   :  { %3551 = vpow2.f32 %v3180_v46  ;;  %v4383_v48 = vld [vmem:[#allocation28_spill] sm:$0xff] }
 0x343   :  { %3553 = vtanh.f32 %v1409_v51 }
 0x344   :  { %3555 = vpow2.f32 %v3181_v52 }
 0x34d   :  { %v3550_v54 = vpop.eup %3549 }
 0x34e   :  { %v1414_v55 = vadd.f32 1.0, %v3550_v54 }
 0x34f   :  { %v3552_v56 = vpop.eup %3551 }
 0x350   :  { %3557 = vrcp.f32 %v1414_v55  ;;  %v1420_v57 = vadd.f32 1.0, %v3552_v56  ;;  %v3554_v58 = vpop.eup %3553  ;;  %v4384_v56 = vld [vmem:[#allocation29_spill] sm:$0xff] }
 0x351   :  { %v3556_v59 = vpop.eup %3555 }
 0x352   :  { %3559 = vrcp.f32 %v1420_v57  ;;  %v1427_v1 = vadd.f32 1.0, %v3556_v59 }
 0x354   :  { %3561 = vrcp.f32 %v1427_v1 }
 0x35d   :  { %v3558_v60 = vpop.eup %3557 }
 0x35e   :  { %v1431_v61 = vmul.f32 %v3558_v60, %v3554_v58  ;;  %v4385_v58 = vld [vmem:[#allocation27_spill] sm:$0xff] }
 0x35f   :  { %v3560_v63 = vpop.eup %3559 }
 0x360   :  { %v1430_v2 = vmul.f32 %v3560_v63, %v4075_v29  ;;  %v4184_v29 = vld [vmem:[#allocation4 + $0x40] ss:$16 sps:$4 sm:$0xff]  }
 0x361   :  { %v3562_v4 = vpop.eup %3561 }
 0x362   :  { %v4115_v3 = vadd.f32 %v1431_v61, %v1430_v2 }
 0x364   :  { %3563 = vtanh.f32 %v4115_v3 }
 0x371   :  { %v3564_v5 = vpop.eup %3563 }
 0x372   :  { %v1434_v32 = vmul.f32 %v3564_v5, %v3562_v4 }
 0x374   :  { %v1436_v62 = vpack.c.bf16 %v1434_v32, %v1434_v32  ;;  %1439 = vst [vmem:[#allocation13 + $0x10] sm:$0xff] %v1434_v32 }
 0x376   :  { %1437 = vst [vmem:[#allocation5] sm:$0xf] %v1436_v62 }
 0x37d   :  { %v1440_v6 = vld [vmem:[#allocation5] sm:$0xf] }
 0x37e   :  { %1672 = vmatmul.mubr.bf16.vlgmr.msra.gmra.mxu0 %v1440_v6  ;;  %1713 = vmatmul.mubr.bf16.vlgmr.msra.gmra.mxu1 %v1440_v6 }
 0x37f   :  { %1985 = vmatprep.mubr.bf16.mxu0 %v4380_v13  ;;  %2026 = vmatprep.mubr.bf16.mxu1 %v4380_v13 }
 0x380   :  { %1954 = vmatpush1.bf16.msra.mxu0 %v4124_v7  ;;  %1995 = vmatpush1.bf16.msra.mxu1 %v4126_v11 }
 0x381   :  { %1955 = vmatprep.subr.bf16.mxu0 %v4132_v21  ;;  %1996 = vmatprep.subr.bf16.mxu1 %v4134_v35 }
 0x384   :  { %1956 = vmatpush1.bf16.msra.mxu0 %v4136_v16  ;;  %1997 = vmatpush1.bf16.msra.mxu1 %v4138_v9 }
 0x385   :  { %1957 = vmatprep.subr.bf16.mxu0 %v4144_v33  ;;  %1998 = vmatprep.subr.bf16.mxu1 %v4146_v34 }
 0x388   :  { %1958 = vmatpush1.bf16.msra.mxu0 %v4148_v27  ;;  %1999 = vmatpush1.bf16.msra.mxu1 %v4150_v22 }
 0x389   :  { %1959 = vmatprep.subr.bf16.mxu0 %v4156_v18  ;;  %2000 = vmatprep.subr.bf16.mxu1 %v4158_v24 }
 0x38c   :  { %1960 = vmatpush1.bf16.msra.mxu0 %v4160_v20  ;;  %2001 = vmatpush1.bf16.msra.mxu1 %v4162_v28 }
 0x38d   :  { %1961 = vmatprep.subr.bf16.mxu0 %v4168_v0  ;;  %2002 = vmatprep.subr.bf16.mxu1 %v4170_v14 }
 0x390   :  { %1962 = vmatpush1.bf16.msra.mxu0 %v4172_v15  ;;  %2003 = vmatpush1.bf16.msra.mxu1 %v4174_v12 }
 0x391   :  { %1963 = vmatprep.subr.bf16.mxu0 %v4180_v10  ;;  %2004 = vmatprep.subr.bf16.mxu1 %v4182_v19 }
 0x394   :  { %1964 = vmatpush1.bf16.msra.mxu0 %v4184_v29  ;;  %2005 = vmatpush1.bf16.msra.mxu1 %v4186_v25 }
 0x395   :  { %1965 = vmatprep.subr.bf16.mxu0 %v4192_v26  ;;  %2006 = vmatprep.subr.bf16.mxu1 %v4194_v30 }
 0x398   :  { %1966 = vmatpush1.bf16.msra.mxu0 %v4196_v17  ;;  %2007 = vmatpush1.bf16.msra.mxu1 %v4198_v23 }
 0x399   :  { %1967 = vmatprep.subr.bf16.mxu0 %v4202_v36  ;;  %2008 = vmatprep.subr.bf16.mxu1 %v4204_v37 }
 0x39c   :  { %1968 = vmatpush1.bf16.msra.mxu0 %v4208_v38  ;;  %2009 = vmatpush1.bf16.msra.mxu1 %v4210_v39 }
 0x39d   :  { %2267 = vmatprep.subr.bf16.mxu0 %v4120_v8  ;;  %2308 = vmatprep.subr.bf16.mxu1 %v4122_v53 }
 0x43e   :  { %v1673_v40 = vpop.f32.mrf.mxu0  ;;  %v1714_v41 = vpop.f32.mrf.mxu1 }
 0x43f   :  { %v1721_v43 = vadd.f32 %v1673_v40, %v4382_v42  ;;  %v1723_v59 = vadd.f32 %v1714_v41, %v4385_v58 }
 0x440   :  { %v1675_v45 = vpop.f32.mrf.mxu0  ;;  %v1716_v46 = vpop.f32.mrf.mxu1 }
 0x441   :  { %v3214_v47 = vmul.f32 -1.442695, %v1721_v43  ;;  %v1722_v49 = vadd.f32 %v1675_v45, %v4383_v48  ;;  %v1724_v57 = vadd.f32 %v1716_v46, %v4384_v56  ;;  %v4387_v56 = vld [vmem:[#allocation32_spill] sm:$0xff] }
 0x442   :  { %v1677_v50 = vpop.f32.mrf.mxu0  ;;  %v1718_v51 = vpop.f32.mrf.mxu1 }
 0x443   :  { %3565 = vpow2.f32 %v3214_v47  ;;  %v3215_v52 = vmul.f32 -1.442695, %v1722_v49  ;;  %v3216_v60 = vmul.f32 -1.442695, %v1724_v57  ;;  %v4386_v50 = vld [vmem:[#allocation30_spill] sm:$0xff] }
 0x444   :  { %v1678_v54 = vpop.f32.mrf.mxu0  ;;  %v1719_v55 = vpop.f32.mrf.mxu1 }
 0x445   :  { %3567 = vpow2.f32 %v3215_v52 }
 0x446   :  { %3569 = vtanh.f32 %v1723_v59 }
 0x447   :  { %3571 = vpow2.f32 %v3216_v60 }
 0x450   :  { %v3566_v61 = vpop.eup %3565 }
 0x451   :  { %v1728_v63 = vadd.f32 1.0, %v3566_v61 }
 0x452   :  { %v3568_v1 = vpop.eup %3567 }
 0x453   :  { %3573 = vrcp.f32 %v1728_v63  ;;  %v1734_v2 = vadd.f32 1.0, %v3568_v1  ;;  %v3570_v4 = vpop.eup %3569  ;;  %v4388_v1 = vld [vmem:[#allocation33_spill] sm:$0xff] }
 0x454   :  { %v3572_v5 = vpop.eup %3571 }
 0x455   :  { %3575 = vrcp.f32 %v1734_v2  ;;  %v1741_v40 = vadd.f32 1.0, %v3572_v5 }
 0x457   :  { %3577 = vrcp.f32 %v1741_v40 }
 0x460   :  { %v3574_v32 = vpop.eup %3573 }
 0x461   :  { %v1745_v62 = vmul.f32 %v3574_v32, %v3570_v4  ;;  %v4389_v4 = vld [vmem:[#allocation31_spill] sm:$0xff] }
 0x462   :  { %v3576_v6 = vpop.eup %3575 }
 0x463   :  { %v1744_v42 = vmul.f32 %v3576_v6, %v4115_v3 }
 0x464   :  { %v3578_v41 = vpop.eup %3577 }
 0x465   :  { %v4223_v43 = vadd.f32 %v1745_v62, %v1744_v42 }
 0x467   :  { %3579 = vtanh.f32 %v4223_v43 }
 0x474   :  { %v3580_v45 = vpop.eup %3579 }
 0x475   :  { %v1748_v46 = vmul.f32 %v3580_v45, %v3578_v41 }
 0x477   :  { %v1750_v47 = vpack.c.bf16 %v1748_v46, %v1748_v46  ;;  %1753 = vst [vmem:[#allocation13 + $0x18] sm:$0xff] %v1748_v46 }
 0x479   :  { %1751 = vst [vmem:[#allocation5] sm:$0xf] %v1750_v47 }
 0x480   :  { %v1754_v48 = vld [vmem:[#allocation5] sm:$0xf] }
 0x481   :  { %1986 = vmatmul.mubr.bf16.vlgmr.msra.gmra.mxu0 %v1754_v48  ;;  %2027 = vmatmul.mubr.bf16.vlgmr.msra.gmra.mxu1 %v1754_v48 }
 0x482   :  { %2268 = vmatpush1.bf16.msra.mxu0 %v4124_v7  ;;  %2309 = vmatpush1.bf16.msra.mxu1 %v4126_v11 }
 0x483   :  { %2269 = vmatprep.subr.bf16.mxu0 %v4132_v21  ;;  %2310 = vmatprep.subr.bf16.mxu1 %v4134_v35 }
 0x484   :  { %2299 = vmatprep.mubr.bf16.mxu0 %v4380_v13  ;;  %2340 = vmatprep.mubr.bf16.mxu1 %v4380_v13 }
 0x486   :  { %2270 = vmatpush1.bf16.msra.mxu0 %v4136_v16  ;;  %2311 = vmatpush1.bf16.msra.mxu1 %v4138_v9 }
 0x487   :  { %2271 = vmatprep.subr.bf16.mxu0 %v4144_v33  ;;  %2312 = vmatprep.subr.bf16.mxu1 %v4146_v34 }
 0x48a   :  { %2272 = vmatpush1.bf16.msra.mxu0 %v4148_v27  ;;  %2313 = vmatpush1.bf16.msra.mxu1 %v4150_v22 }
 0x48b   :  { %2273 = vmatprep.subr.bf16.mxu0 %v4156_v18  ;;  %2314 = vmatprep.subr.bf16.mxu1 %v4158_v24 }
 0x48e   :  { %2274 = vmatpush1.bf16.msra.mxu0 %v4160_v20  ;;  %2315 = vmatpush1.bf16.msra.mxu1 %v4162_v28 }
 0x48f   :  { %2275 = vmatprep.subr.bf16.mxu0 %v4168_v0  ;;  %2316 = vmatprep.subr.bf16.mxu1 %v4170_v14 }
 0x492   :  { %2276 = vmatpush1.bf16.msra.mxu0 %v4172_v15  ;;  %2317 = vmatpush1.bf16.msra.mxu1 %v4174_v12 }
 0x493   :  { %2277 = vmatprep.subr.bf16.mxu0 %v4180_v10  ;;  %2318 = vmatprep.subr.bf16.mxu1 %v4182_v19 }
 0x496   :  { %2278 = vmatpush1.bf16.msra.mxu0 %v4184_v29  ;;  %2319 = vmatpush1.bf16.msra.mxu1 %v4186_v25 }
 0x497   :  { %2279 = vmatprep.subr.bf16.mxu0 %v4192_v26  ;;  %2320 = vmatprep.subr.bf16.mxu1 %v4194_v30 }
 0x49a   :  { %2280 = vmatpush1.bf16.msra.mxu0 %v4196_v17  ;;  %2321 = vmatpush1.bf16.msra.mxu1 %v4198_v23 }
 0x49b   :  { %2281 = vmatprep.subr.bf16.mxu0 %v4202_v36  ;;  %2322 = vmatprep.subr.bf16.mxu1 %v4204_v37 }
 0x49e   :  { %2282 = vmatpush1.bf16.msra.mxu0 %v4208_v38  ;;  %2323 = vmatpush1.bf16.msra.mxu1 %v4210_v39 }
 0x49f   :  { %2581 = vmatprep.subr.bf16.mxu0 %v4120_v8  ;;  %2622 = vmatprep.subr.bf16.mxu1 %v4122_v53 }
 0x541   :  { %v1987_v3 = vpop.f32.mrf.mxu0  ;;  %v2028_v49 = vpop.f32.mrf.mxu1 }
 0x542   :  { %v2035_v51 = vadd.f32 %v1987_v3, %v4386_v50  ;;  %v2037_v5 = vadd.f32 %v2028_v49, %v4389_v4 }
 0x543   :  { %v1989_v52 = vpop.f32.mrf.mxu0  ;;  %v2030_v54 = vpop.f32.mrf.mxu1 }
 0x544   :  { %v3249_v55 = vmul.f32 -1.442695, %v2035_v51  ;;  %v2036_v57 = vadd.f32 %v1989_v52, %v4387_v56  ;;  %v2038_v2 = vadd.f32 %v2030_v54, %v4388_v1  ;;  %v4391_v1 = vld [vmem:[#allocation36_spill] sm:$0xff] }
 0x545   :  { %v1991_v58 = vpop.f32.mrf.mxu0  ;;  %v2032_v59 = vpop.f32.mrf.mxu1 }
 0x546   :  { %3581 = vpow2.f32 %v3249_v55  ;;  %v3250_v60 = vmul.f32 -1.442695, %v2036_v57  ;;  %v3251_v32 = vmul.f32 -1.442695, %v2038_v2  ;;  %v4390_v58 = vld [vmem:[#allocation34_spill] sm:$0xff] }
 0x547   :  { %v1992_v61 = vpop.f32.mrf.mxu0  ;;  %v2033_v63 = vpop.f32.mrf.mxu1 }
 0x548   :  { %3583 = vpow2.f32 %v3250_v60 }
 0x549   :  { %3585 = vtanh.f32 %v2037_v5 }
 0x54a   :  { %3587 = vpow2.f32 %v3251_v32 }
 0x553   :  { %v3582_v62 = vpop.eup %3581 }
 0x554   :  { %v2042_v6 = vadd.f32 1.0, %v3582_v62 }
 0x555   :  { %v3584_v40 = vpop.eup %3583 }
 0x556   :  { %3589 = vrcp.f32 %v2042_v6  ;;  %v2048_v42 = vadd.f32 1.0, %v3584_v40  ;;  %v3586_v41 = vpop.eup %3585  ;;  %v4392_v40 = vld [vmem:[#allocation37_spill] sm:$0xff] }
 0x557   :  { %v3588_v45 = vpop.eup %3587 }
 0x558   :  { %3591 = vrcp.f32 %v2048_v42  ;;  %v2055_v3 = vadd.f32 1.0, %v3588_v45  ;;  %v4393_v42 = vld [vmem:[#allocation35_spill] sm:$0xff] }
 0x55a   :  { %3593 = vrcp.f32 %v2055_v3 }
 0x563   :  { %v3590_v46 = vpop.eup %3589 }
 0x564   :  { %v2059_v47 = vmul.f32 %v3590_v46, %v3586_v41 }
 0x565   :  { %v3592_v48 = vpop.eup %3591 }
 0x566   :  { %v2058_v50 = vmul.f32 %v3592_v48, %v4223_v43 }
 0x567   :  { %v3594_v49 = vpop.eup %3593 }
 0x568   :  { %v4265_v51 = vadd.f32 %v2059_v47, %v2058_v50 }
 0x56a   :  { %3595 = vtanh.f32 %v4265_v51 }
 0x577   :  { %v3596_v52 = vpop.eup %3595 }
 0x578   :  { %v2062_v54 = vmul.f32 %v3596_v52, %v3594_v49 }
 0x57a   :  { %v2064_v55 = vpack.c.bf16 %v2062_v54, %v2062_v54  ;;  %2067 = vst [vmem:[#allocation13 + $0x20] sm:$0xff] %v2062_v54 }
 0x57c   :  { %2065 = vst [vmem:[#allocation5] sm:$0xf] %v2064_v55 }
 0x583   :  { %v2068_v56 = vld [vmem:[#allocation5] sm:$0xf] }
 0x584   :  { %2300 = vmatmul.mubr.bf16.vlgmr.msra.gmra.mxu0 %v2068_v56  ;;  %2341 = vmatmul.mubr.bf16.vlgmr.msra.gmra.mxu1 %v2068_v56 }
 0x585   :  { %2582 = vmatpush1.bf16.msra.mxu0 %v4124_v7  ;;  %2623 = vmatpush1.bf16.msra.mxu1 %v4126_v11 }
 0x586   :  { %2583 = vmatprep.subr.bf16.mxu0 %v4132_v21  ;;  %2624 = vmatprep.subr.bf16.mxu1 %v4134_v35 }
 0x587   :  { %2613 = vmatprep.mubr.bf16.mxu0 %v4380_v13  ;;  %2654 = vmatprep.mubr.bf16.mxu1 %v4380_v13 }
 0x589   :  { %2584 = vmatpush1.bf16.msra.mxu0 %v4136_v16  ;;  %2625 = vmatpush1.bf16.msra.mxu1 %v4138_v9 }
 0x58a   :  { %2585 = vmatprep.subr.bf16.mxu0 %v4144_v33  ;;  %2626 = vmatprep.subr.bf16.mxu1 %v4146_v34 }
 0x58d   :  { %2586 = vmatpush1.bf16.msra.mxu0 %v4148_v27  ;;  %2627 = vmatpush1.bf16.msra.mxu1 %v4150_v22 }
 0x58e   :  { %2587 = vmatprep.subr.bf16.mxu0 %v4156_v18  ;;  %2628 = vmatprep.subr.bf16.mxu1 %v4158_v24 }
 0x591   :  { %2588 = vmatpush1.bf16.msra.mxu0 %v4160_v20  ;;  %2629 = vmatpush1.bf16.msra.mxu1 %v4162_v28 }
 0x592   :  { %2589 = vmatprep.subr.bf16.mxu0 %v4168_v0  ;;  %2630 = vmatprep.subr.bf16.mxu1 %v4170_v14 }
 0x595   :  { %2590 = vmatpush1.bf16.msra.mxu0 %v4172_v15  ;;  %2631 = vmatpush1.bf16.msra.mxu1 %v4174_v12 }
 0x596   :  { %2591 = vmatprep.subr.bf16.mxu0 %v4180_v10  ;;  %2632 = vmatprep.subr.bf16.mxu1 %v4182_v19 }
 0x599   :  { %2592 = vmatpush1.bf16.msra.mxu0 %v4184_v29  ;;  %2633 = vmatpush1.bf16.msra.mxu1 %v4186_v25 }
 0x59a   :  { %2593 = vmatprep.subr.bf16.mxu0 %v4192_v26  ;;  %2634 = vmatprep.subr.bf16.mxu1 %v4194_v30 }
 0x59d   :  { %2594 = vmatpush1.bf16.msra.mxu0 %v4196_v17  ;;  %2635 = vmatpush1.bf16.msra.mxu1 %v4198_v23 }
 0x59e   :  { %2595 = vmatprep.subr.bf16.mxu0 %v4202_v36  ;;  %2636 = vmatprep.subr.bf16.mxu1 %v4204_v37 }
 0x5a1   :  { %2596 = vmatpush1.bf16.msra.mxu0 %v4208_v38  ;;  %2637 = vmatpush1.bf16.msra.mxu1 %v4210_v39 }
 0x5a2   :  { %2895 = vmatprep.subr.bf16.mxu0 %v4120_v8  ;;  %2936 = vmatprep.subr.bf16.mxu1 %v4122_v53 }
 0x644   :  { %v2301_v43 = vpop.f32.mrf.mxu0  ;;  %v2342_v57 = vpop.f32.mrf.mxu1 }
 0x645   :  { %v2349_v59 = vadd.f32 %v2301_v43, %v4390_v58  ;;  %v2351_v53 = vadd.f32 %v2342_v57, %v4393_v42 }
 0x646   :  { %v2303_v60 = vpop.f32.mrf.mxu0  ;;  %v2344_v61 = vpop.f32.mrf.mxu1 }
 0x647   :  { %v3284_v63 = vmul.f32 -1.442695, %v2349_v59  ;;  %v2350_v2 = vadd.f32 %v2303_v60, %v4391_v1  ;;  %v2352_v8 = vadd.f32 %v2344_v61, %v4392_v40 }
 0x648   :  { %v2305_v4 = vpop.f32.mrf.mxu0  ;;  %v2346_v5 = vpop.f32.mrf.mxu1 }
 0x649   :  { %3597 = vpow2.f32 %v3284_v63  ;;  %v3285_v32 = vmul.f32 -1.442695, %v2350_v2  ;;  %v3286_v41 = vmul.f32 -1.442695, %v2352_v8 }
 0x64a   :  { %v2306_v62 = vpop.f32.mrf.mxu0  ;;  %v2347_v6 = vpop.f32.mrf.mxu1 }
 0x64b   :  { %3599 = vpow2.f32 %v3285_v32  ;;  %v4398_v62 = vld [vmem:[#allocation42_spill] sm:$0xff] }
 0x64c   :  { %3601 = vtanh.f32 %v2351_v53 }
 0x64d   :  { %3603 = vpow2.f32 %v3286_v41 }
 0x656   :  { %v3598_v45 = vpop.eup %3597 }
 0x657   :  { %v2356_v46 = vadd.f32 1.0, %v3598_v45 }
 0x658   :  { %v3600_v47 = vpop.eup %3599 }
 0x659   :  { %3605 = vrcp.f32 %v2356_v46  ;;  %v2362_v48 = vadd.f32 1.0, %v3600_v47  ;;  %v3602_v3 = vpop.eup %3601 }
 0x65a   :  { %v3604_v50 = vpop.eup %3603 }
 0x65b   :  { %3607 = vrcp.f32 %v2362_v48  ;;  %v2369_v55 = vadd.f32 1.0, %v3604_v50  ;;  %v4399_v50 = vld [vmem:[#allocation43_spill] sm:$0xff] }
 0x65d   :  { %3609 = vrcp.f32 %v2369_v55 }
 0x666   :  { %v3606_v49 = vpop.eup %3605 }
 0x667   :  { %v2373_v52 = vmul.f32 %v3606_v49, %v3602_v3 }
 0x668   :  { %v3608_v54 = vpop.eup %3607 }
 0x669   :  { %v2372_v56 = vmul.f32 %v3608_v54, %v4265_v51 }
 0x66a   :  { %v3610_v57 = vpop.eup %3609 }
 0x66b   :  { %v4307_v43 = vadd.f32 %v2373_v52, %v2372_v56 }
 0x66d   :  { %3611 = vtanh.f32 %v4307_v43 }
 0x67a   :  { %v3612_v58 = vpop.eup %3611 }
 0x67b   :  { %v2376_v59 = vmul.f32 %v3612_v58, %v3610_v57 }
 0x67d   :  { %v2378_v60 = vpack.c.bf16 %v2376_v59, %v2376_v59  ;;  %2381 = vst [vmem:[#allocation13 + $0x28] sm:$0xff] %v2376_v59 }
 0x67f   :  { %2379 = vst [vmem:[#allocation5] sm:$0xf] %v2378_v60 }
 0x686   :  { %v2382_v61 = vld [vmem:[#allocation5] sm:$0xf] }
 0x687   :  { %2614 = vmatmul.mubr.bf16.vlgmr.msra.gmra.mxu0 %v2382_v61  ;;  %2655 = vmatmul.mubr.bf16.vlgmr.msra.gmra.mxu1 %v2382_v61 }
 0x688   :  { %2896 = vmatpush1.bf16.msra.mxu0 %v4124_v7  ;;  %2937 = vmatpush1.bf16.msra.mxu1 %v4126_v11  ;;  %v4394_v11 = vld [vmem:[#allocation38_spill] sm:$0xff] }
 0x689   :  { %2897 = vmatprep.subr.bf16.mxu0 %v4132_v21  ;;  %2938 = vmatprep.subr.bf16.mxu1 %v4134_v35 }
 0x68a   :  { %2927 = vmatprep.mubr.bf16.mxu0 %v4380_v13  ;;  %2968 = vmatprep.mubr.bf16.mxu1 %v4380_v13 }
 0x68c   :  { %2898 = vmatpush1.bf16.msra.mxu0 %v4136_v16  ;;  %2939 = vmatpush1.bf16.msra.mxu1 %v4138_v9 }
 0x68d   :  { %2899 = vmatprep.subr.bf16.mxu0 %v4144_v33  ;;  %2940 = vmatprep.subr.bf16.mxu1 %v4146_v34  ;;  %v4395_v33 = vld [vmem:[#allocation40_spill] sm:$0xff] }
 0x690   :  { %2900 = vmatpush1.bf16.msra.mxu0 %v4148_v27  ;;  %2941 = vmatpush1.bf16.msra.mxu1 %v4150_v22 }
 0x691   :  { %2901 = vmatprep.subr.bf16.mxu0 %v4156_v18  ;;  %2942 = vmatprep.subr.bf16.mxu1 %v4158_v24 }
 0x694   :  { %2902 = vmatpush1.bf16.msra.mxu0 %v4160_v20  ;;  %2943 = vmatpush1.bf16.msra.mxu1 %v4162_v28  ;;  %v4396_v28 = vld [vmem:[#allocation41_spill] sm:$0xff] }
 0x695   :  { %2903 = vmatprep.subr.bf16.mxu0 %v4168_v0  ;;  %2944 = vmatprep.subr.bf16.mxu1 %v4170_v14  ;;  %v4397_v14 = vld [vmem:[#allocation39_spill] sm:$0xff] }
 0x698   :  { %2904 = vmatpush1.bf16.msra.mxu0 %v4172_v15  ;;  %2945 = vmatpush1.bf16.msra.mxu1 %v4174_v12 }
 0x699   :  { %2905 = vmatprep.subr.bf16.mxu0 %v4180_v10  ;;  %2946 = vmatprep.subr.bf16.mxu1 %v4182_v19 }
 0x69c   :  { %2906 = vmatpush1.bf16.msra.mxu0 %v4184_v29  ;;  %2947 = vmatpush1.bf16.msra.mxu1 %v4186_v25 }
 0x69d   :  { %2907 = vmatprep.subr.bf16.mxu0 %v4192_v26  ;;  %2948 = vmatprep.subr.bf16.mxu1 %v4194_v30 }
 0x6a0   :  { %2908 = vmatpush1.bf16.msra.mxu0 %v4196_v17  ;;  %2949 = vmatpush1.bf16.msra.mxu1 %v4198_v23 }
 0x6a1   :  { %2909 = vmatprep.subr.bf16.mxu0 %v4202_v36  ;;  %2950 = vmatprep.subr.bf16.mxu1 %v4204_v37 }
 0x6a4   :  { %2910 = vmatpush1.bf16.msra.mxu0 %v4208_v38  ;;  %2951 = vmatpush1.bf16.msra.mxu1 %v4210_v39 }
 0x747   :  { %v2615_v13 = vpop.f32.mrf.mxu0  ;;  %v2656_v7 = vpop.f32.mrf.mxu1 }
 0x748   :  { %v2663_v21 = vadd.f32 %v2615_v13, %v4394_v11  ;;  %v2665_v15 = vadd.f32 %v2656_v7, %v4397_v14 }
 0x749   :  { %v2617_v35 = vpop.f32.mrf.mxu0  ;;  %v2658_v16 = vpop.f32.mrf.mxu1 }
 0x74a   :  { %v3319_v9 = vmul.f32 -1.442695, %v2663_v21  ;;  %v2664_v34 = vadd.f32 %v2617_v35, %v4395_v33  ;;  %v2666_v0 = vadd.f32 %v2658_v16, %v4396_v28 }
 0x74b   :  { %v2619_v27 = vpop.f32.mrf.mxu0  ;;  %v2660_v22 = vpop.f32.mrf.mxu1 }
 0x74c   :  { %3613 = vpow2.f32 %v3319_v9  ;;  %v3320_v18 = vmul.f32 -1.442695, %v2664_v34  ;;  %v3321_v12 = vmul.f32 -1.442695, %v2666_v0 }
 0x74d   :  { %v2620_v24 = vpop.f32.mrf.mxu0  ;;  %v2661_v20 = vpop.f32.mrf.mxu1 }
 0x74e   :  { %3615 = vpow2.f32 %v3320_v18 }
 0x74f   :  { %3617 = vtanh.f32 %v2665_v15 }
 0x750   :  { %3619 = vpow2.f32 %v3321_v12 }
 0x759   :  { %v3614_v10 = vpop.eup %3613 }
 0x75a   :  { %v2670_v19 = vadd.f32 1.0, %v3614_v10 }
 0x75b   :  { %v3616_v29 = vpop.eup %3615 }
 0x75c   :  { %3621 = vrcp.f32 %v2670_v19  ;;  %v2676_v25 = vadd.f32 1.0, %v3616_v29  ;;  %v3618_v26 = vpop.eup %3617 }
 0x75d   :  { %v3620_v30 = vpop.eup %3619 }
 0x75e   :  { %3623 = vrcp.f32 %v2676_v25  ;;  %v2683_v37 = vadd.f32 1.0, %v3620_v30 }
 0x760   :  { %3625 = vrcp.f32 %v2683_v37 }
 0x769   :  { %v3622_v17 = vpop.eup %3621 }
 0x76a   :  { %v2687_v23 = vmul.f32 %v3622_v17, %v3618_v26 }
 0x76b   :  { %v3624_v36 = vpop.eup %3623 }
 0x76c   :  { %v2686_v38 = vmul.f32 %v3624_v36, %v4307_v43 }
 0x76d   :  { %v3626_v51 = vpop.eup %3625 }
 0x76e   :  { %v2688_v39 = vadd.f32 %v2687_v23, %v2686_v38 }
 0x770   :  { %3627 = vtanh.f32 %v2688_v39 }
 0x77d   :  { %v3628_v63 = vpop.eup %3627 }
 0x77e   :  { %v2690_v1 = vmul.f32 %v3628_v63, %v3626_v51 }
 0x780   :  { %v2692_v2 = vpack.c.bf16 %v2690_v1, %v2690_v1  ;;  %2695 = vst [vmem:[#allocation13 + $0x30] sm:$0xff] %v2690_v1 }
 0x782   :  { %2693 = vst [vmem:[#allocation5] sm:$0xf] %v2692_v2 }
 0x789   :  { %v2696_v4 = vld [vmem:[#allocation5] sm:$0xf] }
 0x78a   :  { %2928 = vmatmul.mubr.bf16.vlgmr.msra.gmra.mxu0 %v2696_v4  ;;  %2969 = vmatmul.mubr.bf16.vlgmr.msra.gmra.mxu1 %v2696_v4 }
 0x84a   :  { %v2929_v5 = vpop.f32.mrf.mxu0  ;;  %v2970_v32 = vpop.f32.mrf.mxu1 }
 0x84b   :  { %v2977_v6 = vadd.f32 %v2929_v5, %v4398_v62  ;;  %v2979_v49 = vadd.f32 %v2970_v32, %v4399_v50 }
 0x84c   :  { %v2931_v40 = vpop.f32.mrf.mxu0  ;;  %v2972_v8 = vpop.f32.mrf.mxu1 }
 0x84d   :  { %v3354_v42 = vmul.f32 -1.442695, %v2977_v6  ;;  %v2978_v53 = vadd.f32 %v2931_v40, %v4023_v31  ;;  %v2980_v3 = vadd.f32 %v2972_v8, %v4026_v44 }
 0x84e   :  { %v2933_v41 = vpop.f32.mrf.mxu0  ;;  %v2974_v45 = vpop.f32.mrf.mxu1 }
 0x84f   :  { %3629 = vpow2.f32 %v3354_v42  ;;  %v3355_v46 = vmul.f32 -1.442695, %v2978_v53  ;;  %v3356_v52 = vmul.f32 -1.442695, %v2980_v3 }
 0x850   :  { %v2934_v47 = vpop.f32.mrf.mxu0  ;;  %v2975_v48 = vpop.f32.mrf.mxu1 }
 0x851   :  { %3631 = vpow2.f32 %v3355_v46 }
 0x852   :  { %3633 = vtanh.f32 %v2979_v49 }
 0x853   :  { %3635 = vpow2.f32 %v3356_v52 }
 0x85c   :  { %v3630_v54 = vpop.eup %3629 }
 0x85d   :  { %v2984_v55 = vadd.f32 1.0, %v3630_v54 }
 0x85e   :  { %v3632_v56 = vpop.eup %3631 }
 0x85f   :  { %3637 = vrcp.f32 %v2984_v55  ;;  %v2990_v43 = vadd.f32 1.0, %v3632_v56  ;;  %v3634_v31 = vpop.eup %3633 }
 0x860   :  { %v3636_v57 = vpop.eup %3635 }
 0x861   :  { %3639 = vrcp.f32 %v2990_v43  ;;  %v2997_v61 = vadd.f32 1.0, %v3636_v57 }
 0x863   :  { %3641 = vrcp.f32 %v2997_v61 }
 0x86c   :  { %v3638_v58 = vpop.eup %3637 }
 0x86d   :  { %v3001_v59 = vmul.f32 %v3638_v58, %v3634_v31 }
 0x86e   :  { %v3640_v60 = vpop.eup %3639 }
 0x86f   :  { %v3000_v13 = vmul.f32 %v3640_v60, %v2688_v39 }
 0x870   :  { %v3642_v44 = vpop.eup %3641 }
 0x871   :  { %v3002_v7 = vadd.f32 %v3001_v59, %v3000_v13 }
 0x873   :  { %3643 = vtanh.f32 %v3002_v7 }
 0x880   :  { %v3644_v11 = vpop.eup %3643 }
 0x881   :  { %v3004_v21 = vmul.f32 %v3644_v11, %v3642_v44 }
 0x883   :  { %v3006_v35 = vpack.c.bf16 %v3004_v21, %v3004_v21  ;;  %3009 = vst [vmem:[#allocation13 + $0x38] sm:$0xff] %v3004_v21 }
 0x884   :  { %3736 = shalt.err (!%p3733_p10)
}
 0x885   :  { %s3763_s10 = smov 128   ;;  %s3764_s11 = smov 8   ;;  %3007 = vst [vmem:[#allocation5] sm:$0xf] %v3006_v35 }
 0x886   :  { %3021 = dma.vmem_to_hbm [thread:$0]  %s3016_s3, 1024, %s4358_s4, [#allocation10], %s3763_s10, %s3763_s10, %s3764_s11  }
 0x887   :  { %3753 = dma.done.wait [#allocation10], 1024  }
 0x888   :  { %3754 = vsyncadd [#allocation10], 4294966272 }
 0x889   :  { %3025 = vsyncpa [#allocation9], 1 }
 0x88a   :  { %3026 = vsyncpa [#allocation12], 1 }
 0x88b   :  { %3027 = vsyncpa [#allocation10], 1 }
 0x88c   :  { %3028 = vsyncmov [#allocation7] }
 0x88f   :  { %s3029_s14 = vpop.sfrf %3028 }
 0x890   :  { %p3357_p11 = scmp.ne.s32.totalorder %s3029_s14, 0 }
 0x892   :  { %3033 = shalt.err (%p3357_p11)  }
 0x893   :  { %3035 = vsyncmov [#allocation7 + $0x1] }
 0x896   :  { %s3036_s15 = vpop.sfrf %3035 }
 0x897   :  { %p3358_p12 = scmp.ne.s32.totalorder %s3036_s15, 0 }
 0x899   :  { %3040 = shalt.err (%p3358_p12)  }

</bundles_post_ra>
